<compile_context>
chip_gen: v7x
topology: tpu7x:2x2x1
jax: 0.10.0
libtpu: 0.0.40
codegen_flags: <defaults>
</compile_context>

<pallas_src>
import jax
import jax.numpy as jnp
from jax.experimental import pallas as pl
from jax.experimental.pallas import tpu as pltpu


def rnn_chunk_kernel(x_ref, wx_ref, b_ref, wh_ref, out_ref, h_ref):
    """One grid step == one chunk of t_chunk RNN time steps.

    x_ref  : (tc, B_pad, D_in)     inputs for this chunk (f32)
    wx_ref : (D_in, H_pad)         Wx^T, zero-padded columns (f32 or bf16)
    b_ref  : (1, H_pad)            bias, zero-padded (f32)
    wh_ref : (H_pad, H_pad)        Wh^T, zero-padded rows/cols (f32 or bf16)
    out_ref: (tc, B_pad, H_pad)    hidden states for this chunk (f32)
    h_ref  : (B_pad, H_pad) f32    hidden state carried across steps/chunks
    """
    c = pl.program_id(0)
    tc, b_pad, d_in = x_ref.shape
    h_pad = wh_ref.shape[1]
    w_dt = wx_ref.dtype

    @pl.when(c == 0)
    def _():
        # PyTorch forward() starts from h = zeros((batch, latent_size)).
        h_ref[...] = jnp.zeros_like(h_ref)

    # ---- Off the critical path: input projection for the WHOLE chunk as one
    # full-occupancy MXU matmul (M = tc * B_pad rows), bias folded in.
    # Staged into out_ref and overwritten in place by the recurrence below.
    x2d = x_ref[...].reshape(tc * b_pad, d_in).astype(w_dt)
    pre = jnp.dot(x2d, wx_ref[...], preferred_element_type=jnp.float32)
    pre = pre + b_ref[...]                       # (1, H_pad) broadcasts
    out_ref[...] = pre.reshape(tc, b_pad, h_pad)

    # ---- Serial recurrence: per step only  h = tanh(pre[t] + h @ Wh^T).
    wh = wh_ref[...]                             # resident, hoisted

    def step(t, carry):
        rec = jnp.dot(h_ref[...].astype(wh.dtype), wh,
                      preferred_element_type=jnp.float32)
        h_new = jnp.tanh(out_ref[t] + rec)       # act_encode = tanh (EUP)
        out_ref[t] = h_new                       # lane-dense (H_pad % 128 == 0)
        h_ref[...] = h_new
        return carry

    jax.lax.fori_loop(0, tc, step, 0, unroll=min(8, tc))


def _round_up(a, m):
    return ((a + m - 1) // m) * m


def rnn_forward(x, wx, bx, wh, *, t_chunk=None, mxu_dtype=jnp.float32,
                vmem_budget_bytes=40 * 1024 * 1024):
    """RNN forward.

    x : (T, B, D_in) f32
    wx: (H, D_in)  linearX.weight (nn.Linear layout)
    bx: (H,)       linearX.bias
    wh: (H, H)     linearH.weight (bias=False)
    mxu_dtype: dtype of the MXU weight operands (jnp.bfloat16 on v6e/v7x);
               accumulation / elementwise / outputs stay f32.
    Returns the sequence of hidden states, shape (T, B, H) f32.
    """
    T, B, D_in = x.shape
    H = wx.shape[0]

    f32 = jnp.float32
    b_pad = _round_up(B, 8)        # full sublane tile
    h_pad = _round_up(H, 128)      # lane-dense stores + matmul N dim

    x_p = x.astype(f32)
    if b_pad != B:
        x_p = jnp.pad(x_p, ((0, 0), (0, b_pad - B), (0, 0)))

    # Zero-padded transposed weights / bias.  Padded hidden columns stay 0
    # through the recurrence (zero Wh rows/cols + zero bias -> tanh(0) = 0).
    wx_t = jnp.zeros((D_in, h_pad), f32).at[:, :H].set(wx.T.astype(f32))
    wh_t = jnp.zeros((h_pad, h_pad), f32).at[:H, :H].set(wh.T.astype(f32))
    b_p = jnp.zeros((1, h_pad), f32).at[:, :H].set(bx.reshape(1, H).astype(f32))
    wx_mxu = wx_t.astype(mxu_dtype)
    wh_mxu = wh_t.astype(mxu_dtype)

    # ---- VMEM-derived time chunk (double-buffered x and out slabs dominate).
    w_item = jnp.dtype(mxu_dtype).itemsize
    d_in_lanes = _round_up(D_in, 128)                 # VMEM lane padding of x tile
    per_step = b_pad * (d_in_lanes * 4 + h_pad * 4)   # x tile + out tile / time step
    fixed = (D_in * h_pad + h_pad * h_pad) * w_item + h_pad * 4 + b_pad * h_pad * 4
    if t_chunk is None:
        t_chunk = max(8, (vmem_budget_bytes - fixed) // (2 * per_step))
        t_chunk = int(min(t_chunk, 256))
    tc = int(min(t_chunk, _round_up(T, 8)))

    # Pad T so chunks divide evenly (padded steps are computed but sliced off;
    # note any "final hidden state" would be the post-padding one).
    t_pad = _round_up(T, tc)
    if t_pad != T:
        x_p = jnp.pad(x_p, ((0, t_pad - T), (0, 0), (0, 0)))
    n_chunks = t_pad // tc

    vmem_limit = int(min(max(2 * per_step * tc + fixed + (4 << 20), 32 << 20),
                         48 << 20))

    def call(resident_mode):
        extra = {} if resident_mode is None else {"pipeline_mode": resident_mode}
        return pl.pallas_call(
            rnn_chunk_kernel,
            out_shape=jax.ShapeDtypeStruct((t_pad, b_pad, h_pad), f32),
            grid_spec=pltpu.PrefetchScalarGridSpec(
                num_scalar_prefetch=0,
                grid=(n_chunks,),
                in_specs=[
                    pl.BlockSpec((tc, b_pad, D_in), lambda c: (c, 0, 0)),   # x chunk
                    pl.BlockSpec((D_in, h_pad), lambda c: (0, 0), **extra),  # Wx^T
                    pl.BlockSpec((1, h_pad), lambda c: (0, 0), **extra),     # bias
                    pl.BlockSpec((h_pad, h_pad), lambda c: (0, 0), **extra), # Wh^T
                ],
                out_specs=pl.BlockSpec((tc, b_pad, h_pad), lambda c: (c, 0, 0)),
                scratch_shapes=[pltpu.VMEM((b_pad, h_pad), f32)],
            ),
            compiler_params=pltpu.CompilerParams(
                # Time-chunk axis carries the recurrence -> sequential.
                dimension_semantics=("arbitrary",),
                vmem_limit_bytes=vmem_limit,
            ),
        )(x_p, wx_mxu, b_p, wh_mxu)

    try:
        # Constant blocks -> single-buffer them (no 2x weight copy in VMEM).
        out = jax.block_until_ready(call(pl.Buffered(1)))
    except Exception:
        # Fallback for jax versions where single-buffer pipeline_mode is
        # unsupported: default double-buffered resident blocks (still correct).
        out = jax.block_until_ready(call(None))

    return out[:T, :B, :H]


def rnn_forward_ref(x, wx, bx, wh):
    """Plain-JAX reference matching the PyTorch forward()."""
    def step(h, x_t):
        h_new = jnp.tanh(x_t @ wx.T + bx + h @ wh.T)
        return h_new, h_new

    B = x.shape[1]
    H = wx.shape[0]
    h0 = jnp.zeros((B, H), jnp.float32)
    _, hs = jax.lax.scan(step, h0, x)
    return hs


if __name__ == "__main__":
    # Small shapes consistent with the module's forward: (length, batch, dimX)
    T, B, D_IN, H = 8, 2, 16, 32

    key = jax.random.PRNGKey(0)
    kx, kwx, kwh, kbx = jax.random.split(key, 4)

    x = jax.random.normal(kx, (T, B, D_IN), dtype=jnp.float32)
    wx = jax.random.normal(kwx, (H, D_IN), dtype=jnp.float32) * 0.1  # linearX.weight
    bx = jax.random.normal(kbx, (H,), dtype=jnp.float32) * 0.1       # linearX.bias
    wh = jax.random.normal(kwh, (H, H), dtype=jnp.float32) * 0.1     # linearH.weight

    ref = rnn_forward_ref(x, wx, bx, wh)

    # f32 everywhere (safe on all generations), tight tolerance.
    out = jax.block_until_ready(rnn_forward(x, wx, bx, wh))
    assert out.shape == (T, B, H)
    assert jnp.allclose(out, ref, atol=1e-5, rtol=1e-5)

    # bf16 MXU operands (recommended on v6e/v7x), f32 accumulation/elementwise.
    out_bf16 = jax.block_until_ready(
        rnn_forward(x, wx, bx, wh, mxu_dtype=jnp.bfloat16))
    assert out_bf16.shape == (T, B, H)
    assert jnp.allclose(out_bf16, ref, atol=5e-2, rtol=5e-2)

    print("KERNEL_OK")
</pallas_src>

<mosaic_0001>
module attributes {stable_mosaic.version = 11 : i64} {
  func.func @rnn_chunk_kernel(%arg0: i32, %arg1: memref<8x8x16xf32, #tpu.memory_space<vmem>>, %arg2: memref<16x128xf32, #tpu.memory_space<vmem>>, %arg3: memref<1x128xf32, #tpu.memory_space<vmem>>, %arg4: memref<128x128xf32, #tpu.memory_space<vmem>>, %arg5: memref<8x8x128xf32, #tpu.memory_space<vmem>>, %arg6: memref<8x128xf32, #tpu.memory_space<vmem>>) attributes {dimension_semantics = [#tpu.dimension_semantics<arbitrary>], iteration_bounds = array<i64: 1>, scalar_prefetch = 0 : i64, scratch_operands = 1 : i64, tpu.core_type = #tpu.core_type<tc>, window_params = [{transform_indices = @transform_0, window_bounds = array<i64: 8, 8, 16>}, {pipeline_mode = #tpu.pipeline_mode<synchronous>, transform_indices = @transform_1, window_bounds = array<i64: 16, 128>}, {pipeline_mode = #tpu.pipeline_mode<synchronous>, transform_indices = @transform_2, window_bounds = array<i64: 1, 128>}, {pipeline_mode = #tpu.pipeline_mode<synchronous>, transform_indices = @transform_3, window_bounds = array<i64: 128, 128>}, {transform_indices = @transform_4, window_bounds = array<i64: 8, 8, 128>}]} {
    %c0_i32 = arith.constant 0 : i32
    %0 = arith.cmpi eq, %arg0, %c0_i32 : i32
    %1 = arith.extui %0 : i1 to i32
    %c0_i32_0 = arith.constant 0 : i32
    %2 = arith.cmpi ne, %1, %c0_i32_0 : i32
    scf.if %2 {
      %cst_85 = arith.constant 0.000000e+00 : f32
      %109 = vector.broadcast %cst_85 : f32 to vector<8x128xf32>
      %c0_86 = arith.constant 0 : index
      %c0_87 = arith.constant 0 : index
      %110 = vector.load %arg6[%c0_86, %c0_87] : memref<8x128xf32, #tpu.memory_space<vmem>>, vector<8x128xf32>
      tpu.vector_store %arg6[%c0_86, %c0_87], %109 {strides = array<i32>} : memref<8x128xf32, #tpu.memory_space<vmem>>, vector<8x128xf32>,
    } else {
    }
    %c0 = arith.constant 0 : index
    %c0_1 = arith.constant 0 : index
    %c0_2 = arith.constant 0 : index
    %3 = vector.load %arg1[%c0, %c0_1, %c0_2] : memref<8x8x16xf32, #tpu.memory_space<vmem>>, vector<8x8x16xf32>
    %4 = vector.shape_cast %3 : vector<8x8x16xf32> to vector<64x16xf32>
    %c0_3 = arith.constant 0 : index
    %c0_4 = arith.constant 0 : index
    %5 = vector.load %arg2[%c0_3, %c0_4] : memref<16x128xf32, #tpu.memory_space<vmem>>, vector<16x128xf32>
    %cst = arith.constant dense<0.000000e+00> : vector<64x128xf32>
    %6 = tpu.matmul %4, %5, %cst {dimension_numbers = #tpu.dot_dimension_numbers<[1], [0], [0], [1], [0, 0, 1, 1], [], []>} : vector<64x16xf32>, vector<16x128xf32>, vector<64x128xf32> -> vector<64x128xf32>
    %c0_5 = arith.constant 0 : index
    %c0_6 = arith.constant 0 : index
    %7 = vector.load %arg3[%c0_5, %c0_6] : memref<1x128xf32, #tpu.memory_space<vmem>>, vector<1x128xf32>
    %8 = vector.broadcast %7 : vector<1x128xf32> to vector<64x128xf32>
    %9 = arith.addf %6, %8 : vector<64x128xf32>
    %10 = vector.shape_cast %9 : vector<64x128xf32> to vector<8x8x128xf32>
    %c0_7 = arith.constant 0 : index
    %c0_8 = arith.constant 0 : index
    %c0_9 = arith.constant 0 : index
    %11 = vector.load %arg5[%c0_7, %c0_8, %c0_9] : memref<8x8x128xf32, #tpu.memory_space<vmem>>, vector<8x8x128xf32>
    tpu.vector_store %arg5[%c0_7, %c0_8, %c0_9], %10 {strides = array<i32>} : memref<8x8x128xf32, #tpu.memory_space<vmem>>, vector<8x8x128xf32>,
    %c0_10 = arith.constant 0 : index
    %c0_11 = arith.constant 0 : index
    %12 = vector.load %arg4[%c0_10, %c0_11] : memref<128x128xf32, #tpu.memory_space<vmem>>, vector<128x128xf32>
    %c0_i32_12 = arith.constant 0 : i32
    %c0_13 = arith.constant 0 : index
    %c0_14 = arith.constant 0 : index
    %13 = vector.load %arg6[%c0_13, %c0_14] : memref<8x128xf32, #tpu.memory_space<vmem>>, vector<8x128xf32>
    %cst_15 = arith.constant dense<0.000000e+00> : vector<8x128xf32>
    %14 = tpu.matmul %13, %12, %cst_15 {dimension_numbers = #tpu.dot_dimension_numbers<[1], [0], [0], [1], [0, 0, 1, 1], [], []>} : vector<8x128xf32>, vector<128x128xf32>, vector<8x128xf32> -> vector<8x128xf32>
    %15 = arith.index_cast %c0_i32_12 : i32 to index
    %c0_16 = arith.constant 0 : index
    %c0_17 = arith.constant 0 : index
    %16 = vector.load %arg5[%15, %c0_16, %c0_17] : memref<8x8x128xf32, #tpu.memory_space<vmem>>, vector<1x8x128xf32>
    %17 = vector.shape_cast %16 : vector<1x8x128xf32> to vector<8x128xf32>
    %18 = arith.addf %17, %14 : vector<8x128xf32>
    %19 = math.tanh %18 : vector<8x128xf32>
    %20 = arith.index_cast %c0_i32_12 : i32 to index
    %c0_18 = arith.constant 0 : index
    %c0_19 = arith.constant 0 : index
    %21 = vector.load %arg5[%20, %c0_18, %c0_19] : memref<8x8x128xf32, #tpu.memory_space<vmem>>, vector<1x8x128xf32>
    %22 = vector.shape_cast %21 : vector<1x8x128xf32> to vector<8x128xf32>
    %23 = vector.shape_cast %19 : vector<8x128xf32> to vector<1x8x128xf32>
    tpu.vector_store %arg5[%20, %c0_18, %c0_19], %23 {strides = array<i32>} : memref<8x8x128xf32, #tpu.memory_space<vmem>>, vector<1x8x128xf32>,
    %c0_20 = arith.constant 0 : index
    %c0_21 = arith.constant 0 : index
    %24 = vector.load %arg6[%c0_20, %c0_21] : memref<8x128xf32, #tpu.memory_space<vmem>>, vector<8x128xf32>
    tpu.vector_store %arg6[%c0_20, %c0_21], %19 {strides = array<i32>} : memref<8x128xf32, #tpu.memory_space<vmem>>, vector<8x128xf32>,
    %c1_i32 = arith.constant 1 : i32
    %c0_22 = arith.constant 0 : index
    %c0_23 = arith.constant 0 : index
    %25 = vector.load %arg6[%c0_22, %c0_23] : memref<8x128xf32, #tpu.memory_space<vmem>>, vector<8x128xf32>
    %cst_24 = arith.constant dense<0.000000e+00> : vector<8x128xf32>
    %26 = tpu.matmul %25, %12, %cst_24 {dimension_numbers = #tpu.dot_dimension_numbers<[1], [0], [0], [1], [0, 0, 1, 1], [], []>} : vector<8x128xf32>, vector<128x128xf32>, vector<8x128xf32> -> vector<8x128xf32>
    %27 = arith.index_cast %c1_i32 : i32 to index
    %c0_25 = arith.constant 0 : index
    %c0_26 = arith.constant 0 : index
    %28 = vector.load %arg5[%27, %c0_25, %c0_26] : memref<8x8x128xf32, #tpu.memory_space<vmem>>, vector<1x8x128xf32>
    %29 = vector.shape_cast %28 : vector<1x8x128xf32> to vector<8x128xf32>
    %30 = arith.addf %29, %26 : vector<8x128xf32>
    %31 = math.tanh %30 : vector<8x128xf32>
    %32 = arith.index_cast %c1_i32 : i32 to index
    %c0_27 = arith.constant 0 : index
    %c0_28 = arith.constant 0 : index
    %33 = vector.load %arg5[%32, %c0_27, %c0_28] : memref<8x8x128xf32, #tpu.memory_space<vmem>>, vector<1x8x128xf32>
    %34 = vector.shape_cast %33 : vector<1x8x128xf32> to vector<8x128xf32>
    %35 = vector.shape_cast %31 : vector<8x128xf32> to vector<1x8x128xf32>
    tpu.vector_store %arg5[%32, %c0_27, %c0_28], %35 {strides = array<i32>} : memref<8x8x128xf32, #tpu.memory_space<vmem>>, vector<1x8x128xf32>,
    %c0_29 = arith.constant 0 : index
    %c0_30 = arith.constant 0 : index
    %36 = vector.load %arg6[%c0_29, %c0_30] : memref<8x128xf32, #tpu.memory_space<vmem>>, vector<8x128xf32>
    tpu.vector_store %arg6[%c0_29, %c0_30], %31 {strides = array<i32>} : memref<8x128xf32, #tpu.memory_space<vmem>>, vector<8x128xf32>,
    %c2_i32 = arith.constant 2 : i32
    %c0_31 = arith.constant 0 : index
    %c0_32 = arith.constant 0 : index
    %37 = vector.load %arg6[%c0_31, %c0_32] : memref<8x128xf32, #tpu.memory_space<vmem>>, vector<8x128xf32>
    %cst_33 = arith.constant dense<0.000000e+00> : vector<8x128xf32>
    %38 = tpu.matmul %37, %12, %cst_33 {dimension_numbers = #tpu.dot_dimension_numbers<[1], [0], [0], [1], [0, 0, 1, 1], [], []>} : vector<8x128xf32>, vector<128x128xf32>, vector<8x128xf32> -> vector<8x128xf32>
    %39 = arith.index_cast %c2_i32 : i32 to index
    %c0_34 = arith.constant 0 : index
    %c0_35 = arith.constant 0 : index
    %40 = vector.load %arg5[%39, %c0_34, %c0_35] : memref<8x8x128xf32, #tpu.memory_space<vmem>>, vector<1x8x128xf32>
    %41 = vector.shape_cast %40 : vector<1x8x128xf32> to vector<8x128xf32>
    %42 = arith.addf %41, %38 : vector<8x128xf32>
    %43 = math.tanh %42 : vector<8x128xf32>
    %44 = arith.index_cast %c2_i32 : i32 to index
    %c0_36 = arith.constant 0 : index
    %c0_37 = arith.constant 0 : index
    %45 = vector.load %arg5[%44, %c0_36, %c0_37] : memref<8x8x128xf32, #tpu.memory_space<vmem>>, vector<1x8x128xf32>
    %46 = vector.shape_cast %45 : vector<1x8x128xf32> to vector<8x128xf32>
    %47 = vector.shape_cast %43 : vector<8x128xf32> to vector<1x8x128xf32>
    tpu.vector_store %arg5[%44, %c0_36, %c0_37], %47 {strides = array<i32>} : memref<8x8x128xf32, #tpu.memory_space<vmem>>, vector<1x8x128xf32>,
    %c0_38 = arith.constant 0 : index
    %c0_39 = arith.constant 0 : index
    %48 = vector.load %arg6[%c0_38, %c0_39] : memref<8x128xf32, #tpu.memory_space<vmem>>, vector<8x128xf32>
    tpu.vector_store %arg6[%c0_38, %c0_39], %43 {strides = array<i32>} : memref<8x128xf32, #tpu.memory_space<vmem>>, vector<8x128xf32>,
    %c3_i32 = arith.constant 3 : i32
    %c0_40 = arith.constant 0 : index
    %c0_41 = arith.constant 0 : index
    %49 = vector.load %arg6[%c0_40, %c0_41] : memref<8x128xf32, #tpu.memory_space<vmem>>, vector<8x128xf32>
    %cst_42 = arith.constant dense<0.000000e+00> : vector<8x128xf32>
    %50 = tpu.matmul %49, %12, %cst_42 {dimension_numbers = #tpu.dot_dimension_numbers<[1], [0], [0], [1], [0, 0, 1, 1], [], []>} : vector<8x128xf32>, vector<128x128xf32>, vector<8x128xf32> -> vector<8x128xf32>
    %51 = arith.index_cast %c3_i32 : i32 to index
    %c0_43 = arith.constant 0 : index
    %c0_44 = arith.constant 0 : index
    %52 = vector.load %arg5[%51, %c0_43, %c0_44] : memref<8x8x128xf32, #tpu.memory_space<vmem>>, vector<1x8x128xf32>
    %53 = vector.shape_cast %52 : vector<1x8x128xf32> to vector<8x128xf32>
    %54 = arith.addf %53, %50 : vector<8x128xf32>
    %55 = math.tanh %54 : vector<8x128xf32>
    %56 = arith.index_cast %c3_i32 : i32 to index
    %c0_45 = arith.constant 0 : index
    %c0_46 = arith.constant 0 : index
    %57 = vector.load %arg5[%56, %c0_45, %c0_46] : memref<8x8x128xf32, #tpu.memory_space<vmem>>, vector<1x8x128xf32>
    %58 = vector.shape_cast %57 : vector<1x8x128xf32> to vector<8x128xf32>
    %59 = vector.shape_cast %55 : vector<8x128xf32> to vector<1x8x128xf32>
    tpu.vector_store %arg5[%56, %c0_45, %c0_46], %59 {strides = array<i32>} : memref<8x8x128xf32, #tpu.memory_space<vmem>>, vector<1x8x128xf32>,
    %c0_47 = arith.constant 0 : index
    %c0_48 = arith.constant 0 : index
    %60 = vector.load %arg6[%c0_47, %c0_48] : memref<8x128xf32, #tpu.memory_space<vmem>>, vector<8x128xf32>
    tpu.vector_store %arg6[%c0_47, %c0_48], %55 {strides = array<i32>} : memref<8x128xf32, #tpu.memory_space<vmem>>, vector<8x128xf32>,
    %c4_i32 = arith.constant 4 : i32
    %c0_49 = arith.constant 0 : index
    %c0_50 = arith.constant 0 : index
    %61 = vector.load %arg6[%c0_49, %c0_50] : memref<8x128xf32, #tpu.memory_space<vmem>>, vector<8x128xf32>
    %cst_51 = arith.constant dense<0.000000e+00> : vector<8x128xf32>
    %62 = tpu.matmul %61, %12, %cst_51 {dimension_numbers = #tpu.dot_dimension_numbers<[1], [0], [0], [1], [0, 0, 1, 1], [], []>} : vector<8x128xf32>, vector<128x128xf32>, vector<8x128xf32> -> vector<8x128xf32>
    %63 = arith.index_cast %c4_i32 : i32 to index
    %c0_52 = arith.constant 0 : index
    %c0_53 = arith.constant 0 : index
    %64 = vector.load %arg5[%63, %c0_52, %c0_53] : memref<8x8x128xf32, #tpu.memory_space<vmem>>, vector<1x8x128xf32>
    %65 = vector.shape_cast %64 : vector<1x8x128xf32> to vector<8x128xf32>
    %66 = arith.addf %65, %62 : vector<8x128xf32>
    %67 = math.tanh %66 : vector<8x128xf32>
    %68 = arith.index_cast %c4_i32 : i32 to index
    %c0_54 = arith.constant 0 : index
    %c0_55 = arith.constant 0 : index
    %69 = vector.load %arg5[%68, %c0_54, %c0_55] : memref<8x8x128xf32, #tpu.memory_space<vmem>>, vector<1x8x128xf32>
    %70 = vector.shape_cast %69 : vector<1x8x128xf32> to vector<8x128xf32>
    %71 = vector.shape_cast %67 : vector<8x128xf32> to vector<1x8x128xf32>
    tpu.vector_store %arg5[%68, %c0_54, %c0_55], %71 {strides = array<i32>} : memref<8x8x128xf32, #tpu.memory_space<vmem>>, vector<1x8x128xf32>,
    %c0_56 = arith.constant 0 : index
    %c0_57 = arith.constant 0 : index
    %72 = vector.load %arg6[%c0_56, %c0_57] : memref<8x128xf32, #tpu.memory_space<vmem>>, vector<8x128xf32>
    tpu.vector_store %arg6[%c0_56, %c0_57], %67 {strides = array<i32>} : memref<8x128xf32, #tpu.memory_space<vmem>>, vector<8x128xf32>,
    %c5_i32 = arith.constant 5 : i32
    %c0_58 = arith.constant 0 : index
    %c0_59 = arith.constant 0 : index
    %73 = vector.load %arg6[%c0_58, %c0_59] : memref<8x128xf32, #tpu.memory_space<vmem>>, vector<8x128xf32>
    %cst_60 = arith.constant dense<0.000000e+00> : vector<8x128xf32>
    %74 = tpu.matmul %73, %12, %cst_60 {dimension_numbers = #tpu.dot_dimension_numbers<[1], [0], [0], [1], [0, 0, 1, 1], [], []>} : vector<8x128xf32>, vector<128x128xf32>, vector<8x128xf32> -> vector<8x128xf32>
    %75 = arith.index_cast %c5_i32 : i32 to index
    %c0_61 = arith.constant 0 : index
    %c0_62 = arith.constant 0 : index
    %76 = vector.load %arg5[%75, %c0_61, %c0_62] : memref<8x8x128xf32, #tpu.memory_space<vmem>>, vector<1x8x128xf32>
    %77 = vector.shape_cast %76 : vector<1x8x128xf32> to vector<8x128xf32>
    %78 = arith.addf %77, %74 : vector<8x128xf32>
    %79 = math.tanh %78 : vector<8x128xf32>
    %80 = arith.index_cast %c5_i32 : i32 to index
    %c0_63 = arith.constant 0 : index
    %c0_64 = arith.constant 0 : index
    %81 = vector.load %arg5[%80, %c0_63, %c0_64] : memref<8x8x128xf32, #tpu.memory_space<vmem>>, vector<1x8x128xf32>
    %82 = vector.shape_cast %81 : vector<1x8x128xf32> to vector<8x128xf32>
    %83 = vector.shape_cast %79 : vector<8x128xf32> to vector<1x8x128xf32>
    tpu.vector_store %arg5[%80, %c0_63, %c0_64], %83 {strides = array<i32>} : memref<8x8x128xf32, #tpu.memory_space<vmem>>, vector<1x8x128xf32>,
    %c0_65 = arith.constant 0 : index
    %c0_66 = arith.constant 0 : index
    %84 = vector.load %arg6[%c0_65, %c0_66] : memref<8x128xf32, #tpu.memory_space<vmem>>, vector<8x128xf32>
    tpu.vector_store %arg6[%c0_65, %c0_66], %79 {strides = array<i32>} : memref<8x128xf32, #tpu.memory_space<vmem>>, vector<8x128xf32>,
    %c6_i32 = arith.constant 6 : i32
    %c0_67 = arith.constant 0 : index
    %c0_68 = arith.constant 0 : index
    %85 = vector.load %arg6[%c0_67, %c0_68] : memref<8x128xf32, #tpu.memory_space<vmem>>, vector<8x128xf32>
    %cst_69 = arith.constant dense<0.000000e+00> : vector<8x128xf32>
    %86 = tpu.matmul %85, %12, %cst_69 {dimension_numbers = #tpu.dot_dimension_numbers<[1], [0], [0], [1], [0, 0, 1, 1], [], []>} : vector<8x128xf32>, vector<128x128xf32>, vector<8x128xf32> -> vector<8x128xf32>
    %87 = arith.index_cast %c6_i32 : i32 to index
    %c0_70 = arith.constant 0 : index
    %c0_71 = arith.constant 0 : index
    %88 = vector.load %arg5[%87, %c0_70, %c0_71] : memref<8x8x128xf32, #tpu.memory_space<vmem>>, vector<1x8x128xf32>
    %89 = vector.shape_cast %88 : vector<1x8x128xf32> to vector<8x128xf32>
    %90 = arith.addf %89, %86 : vector<8x128xf32>
    %91 = math.tanh %90 : vector<8x128xf32>
    %92 = arith.index_cast %c6_i32 : i32 to index
    %c0_72 = arith.constant 0 : index
    %c0_73 = arith.constant 0 : index
    %93 = vector.load %arg5[%92, %c0_72, %c0_73] : memref<8x8x128xf32, #tpu.memory_space<vmem>>, vector<1x8x128xf32>
    %94 = vector.shape_cast %93 : vector<1x8x128xf32> to vector<8x128xf32>
    %95 = vector.shape_cast %91 : vector<8x128xf32> to vector<1x8x128xf32>
    tpu.vector_store %arg5[%92, %c0_72, %c0_73], %95 {strides = array<i32>} : memref<8x8x128xf32, #tpu.memory_space<vmem>>, vector<1x8x128xf32>,
    %c0_74 = arith.constant 0 : index
    %c0_75 = arith.constant 0 : index
    %96 = vector.load %arg6[%c0_74, %c0_75] : memref<8x128xf32, #tpu.memory_space<vmem>>, vector<8x128xf32>
    tpu.vector_store %arg6[%c0_74, %c0_75], %91 {strides = array<i32>} : memref<8x128xf32, #tpu.memory_space<vmem>>, vector<8x128xf32>,
    %c7_i32 = arith.constant 7 : i32
    %c0_76 = arith.constant 0 : index
    %c0_77 = arith.constant 0 : index
    %97 = vector.load %arg6[%c0_76, %c0_77] : memref<8x128xf32, #tpu.memory_space<vmem>>, vector<8x128xf32>
    %cst_78 = arith.constant dense<0.000000e+00> : vector<8x128xf32>
    %98 = tpu.matmul %97, %12, %cst_78 {dimension_numbers = #tpu.dot_dimension_numbers<[1], [0], [0], [1], [0, 0, 1, 1], [], []>} : vector<8x128xf32>, vector<128x128xf32>, vector<8x128xf32> -> vector<8x128xf32>
    %99 = arith.index_cast %c7_i32 : i32 to index
    %c0_79 = arith.constant 0 : index
    %c0_80 = arith.constant 0 : index
    %100 = vector.load %arg5[%99, %c0_79, %c0_80] : memref<8x8x128xf32, #tpu.memory_space<vmem>>, vector<1x8x128xf32>
    %101 = vector.shape_cast %100 : vector<1x8x128xf32> to vector<8x128xf32>
    %102 = arith.addf %101, %98 : vector<8x128xf32>
    %103 = math.tanh %102 : vector<8x128xf32>
    %104 = arith.index_cast %c7_i32 : i32 to index
    %c0_81 = arith.constant 0 : index
    %c0_82 = arith.constant 0 : index
    %105 = vector.load %arg5[%104, %c0_81, %c0_82] : memref<8x8x128xf32, #tpu.memory_space<vmem>>, vector<1x8x128xf32>
    %106 = vector.shape_cast %105 : vector<1x8x128xf32> to vector<8x128xf32>
    %107 = vector.shape_cast %103 : vector<8x128xf32> to vector<1x8x128xf32>
    tpu.vector_store %arg5[%104, %c0_81, %c0_82], %107 {strides = array<i32>} : memref<8x8x128xf32, #tpu.memory_space<vmem>>, vector<1x8x128xf32>,
    %c0_83 = arith.constant 0 : index
    %c0_84 = arith.constant 0 : index
    %108 = vector.load %arg6[%c0_83, %c0_84] : memref<8x128xf32, #tpu.memory_space<vmem>>, vector<8x128xf32>
    tpu.vector_store %arg6[%c0_83, %c0_84], %103 {strides = array<i32>} : memref<8x128xf32, #tpu.memory_space<vmem>>, vector<8x128xf32>,
    %c8_i32 = arith.constant 8 : i32
    return
  }
  func.func @transform_0(%arg0: i32) -> (i32, i32, i32) {
    %c0_i32 = arith.constant 0 : i32
    %c0_i32_0 = arith.constant 0 : i32
    %c0_i32_1 = arith.constant 0 : i32
    return %arg0, %c0_i32, %c0_i32_0 : i32, i32, i32
  }
  func.func @transform_1(%arg0: i32) -> (i32, i32) {
    %c0_i32 = arith.constant 0 : i32
    %c0_i32_0 = arith.constant 0 : i32
    %c0_i32_1 = arith.constant 0 : i32
    return %c0_i32, %c0_i32_0 : i32, i32
  }
  func.func @transform_2(%arg0: i32) -> (i32, i32) {
    %c0_i32 = arith.constant 0 : i32
    %c0_i32_0 = arith.constant 0 : i32
    %c0_i32_1 = arith.constant 0 : i32
    return %c0_i32, %c0_i32_0 : i32, i32
  }
  func.func @transform_3(%arg0: i32) -> (i32, i32) {
    %c0_i32 = arith.constant 0 : i32
    %c0_i32_0 = arith.constant 0 : i32
    %c0_i32_1 = arith.constant 0 : i32
    return %c0_i32, %c0_i32_0 : i32, i32
  }
  func.func @transform_4(%arg0: i32) -> (i32, i32, i32) {
    %c0_i32 = arith.constant 0 : i32
    %c0_i32_0 = arith.constant 0 : i32
    %c0_i32_1 = arith.constant 0 : i32
    return %arg0, %c0_i32, %c0_i32_0 : i32, i32, i32
  }
}

module attributes {stable_mosaic.version = 11 : i64} {
  func.func @rnn_chunk_kernel(%arg0: i32, %arg1: memref<8x8x16xf32, #tpu.memory_space<vmem>>, %arg2: memref<16x128xf32, #tpu.memory_space<vmem>>, %arg3: memref<1x128xf32, #tpu.memory_space<vmem>>, %arg4: memref<128x128xf32, #tpu.memory_space<vmem>>, %arg5: memref<8x8x128xf32, #tpu.memory_space<vmem>>, %arg6: memref<8x128xf32, #tpu.memory_space<vmem>>) attributes {dimension_semantics = [#tpu.dimension_semantics<arbitrary>], iteration_bounds = array<i64: 1>, scalar_prefetch = 0 : i64, scratch_operands = 1 : i64, tpu.core_type = #tpu.core_type<tc>, window_params = [{transform_indices = @transform_0, window_bounds = array<i64: 8, 8, 16>}, {pipeline_mode = #tpu.pipeline_mode<synchronous>, transform_indices = @transform_1, window_bounds = array<i64: 16, 128>}, {pipeline_mode = #tpu.pipeline_mode<synchronous>, transform_indices = @transform_2, window_bounds = array<i64: 1, 128>}, {pipeline_mode = #tpu.pipeline_mode<synchronous>, transform_indices = @transform_3, window_bounds = array<i64: 128, 128>}, {transform_indices = @transform_4, window_bounds = array<i64: 8, 8, 128>}]} {
    %c0_i32 = arith.constant 0 : i32
    %0 = arith.cmpi eq, %arg0, %c0_i32 : i32
    %1 = arith.extui %0 : i1 to i32
    %c0_i32_0 = arith.constant 0 : i32
    %2 = arith.cmpi ne, %1, %c0_i32_0 : i32
    scf.if %2 {
      %cst_85 = arith.constant 0.000000e+00 : f32
      %109 = vector.broadcast %cst_85 : f32 to vector<8x128xf32>
      %c0_86 = arith.constant 0 : index
      %c0_87 = arith.constant 0 : index
      %110 = vector.load %arg6[%c0_86, %c0_87] : memref<8x128xf32, #tpu.memory_space<vmem>>, vector<8x128xf32>
      tpu.vector_store %arg6[%c0_86, %c0_87], %109 {strides = array<i32>} : memref<8x128xf32, #tpu.memory_space<vmem>>, vector<8x128xf32>,
    } else {
    }
    %c0 = arith.constant 0 : index
    %c0_1 = arith.constant 0 : index
    %c0_2 = arith.constant 0 : index
    %3 = vector.load %arg1[%c0, %c0_1, %c0_2] : memref<8x8x16xf32, #tpu.memory_space<vmem>>, vector<8x8x16xf32>
    %4 = vector.shape_cast %3 : vector<8x8x16xf32> to vector<64x16xf32>
    %c0_3 = arith.constant 0 : index
    %c0_4 = arith.constant 0 : index
    %5 = vector.load %arg2[%c0_3, %c0_4] : memref<16x128xf32, #tpu.memory_space<vmem>>, vector<16x128xf32>
    %cst = arith.constant dense<0.000000e+00> : vector<64x128xf32>
    %6 = tpu.matmul %4, %5, %cst {dimension_numbers = #tpu.dot_dimension_numbers<[1], [0], [0], [1], [0, 0, 1, 1], [], []>} : vector<64x16xf32>, vector<16x128xf32>, vector<64x128xf32> -> vector<64x128xf32>
    %c0_5 = arith.constant 0 : index
    %c0_6 = arith.constant 0 : index
    %7 = vector.load %arg3[%c0_5, %c0_6] : memref<1x128xf32, #tpu.memory_space<vmem>>, vector<1x128xf32>
    %8 = vector.broadcast %7 : vector<1x128xf32> to vector<64x128xf32>
    %9 = arith.addf %6, %8 : vector<64x128xf32>
    %10 = vector.shape_cast %9 : vector<64x128xf32> to vector<8x8x128xf32>
    %c0_7 = arith.constant 0 : index
    %c0_8 = arith.constant 0 : index
    %c0_9 = arith.constant 0 : index
    %11 = vector.load %arg5[%c0_7, %c0_8, %c0_9] : memref<8x8x128xf32, #tpu.memory_space<vmem>>, vector<8x8x128xf32>
    tpu.vector_store %arg5[%c0_7, %c0_8, %c0_9], %10 {strides = array<i32>} : memref<8x8x128xf32, #tpu.memory_space<vmem>>, vector<8x8x128xf32>,
    %c0_10 = arith.constant 0 : index
    %c0_11 = arith.constant 0 : index
    %12 = vector.load %arg4[%c0_10, %c0_11] : memref<128x128xf32, #tpu.memory_space<vmem>>, vector<128x128xf32>
    %c0_i32_12 = arith.constant 0 : i32
    %c0_13 = arith.constant 0 : index
    %c0_14 = arith.constant 0 : index
    %13 = vector.load %arg6[%c0_13, %c0_14] : memref<8x128xf32, #tpu.memory_space<vmem>>, vector<8x128xf32>
    %cst_15 = arith.constant dense<0.000000e+00> : vector<8x128xf32>
    %14 = tpu.matmul %13, %12, %cst_15 {dimension_numbers = #tpu.dot_dimension_numbers<[1], [0], [0], [1], [0, 0, 1, 1], [], []>} : vector<8x128xf32>, vector<128x128xf32>, vector<8x128xf32> -> vector<8x128xf32>
    %15 = arith.index_cast %c0_i32_12 : i32 to index
    %c0_16 = arith.constant 0 : index
    %c0_17 = arith.constant 0 : index
    %16 = vector.load %arg5[%15, %c0_16, %c0_17] : memref<8x8x128xf32, #tpu.memory_space<vmem>>, vector<1x8x128xf32>
    %17 = vector.shape_cast %16 : vector<1x8x128xf32> to vector<8x128xf32>
    %18 = arith.addf %17, %14 : vector<8x128xf32>
    %19 = math.tanh %18 : vector<8x128xf32>
    %20 = arith.index_cast %c0_i32_12 : i32 to index
    %c0_18 = arith.constant 0 : index
    %c0_19 = arith.constant 0 : index
    %21 = vector.load %arg5[%20, %c0_18, %c0_19] : memref<8x8x128xf32, #tpu.memory_space<vmem>>, vector<1x8x128xf32>
    %22 = vector.shape_cast %21 : vector<1x8x128xf32> to vector<8x128xf32>
    %23 = vector.shape_cast %19 : vector<8x128xf32> to vector<1x8x128xf32>
    tpu.vector_store %arg5[%20, %c0_18, %c0_19], %23 {strides = array<i32>} : memref<8x8x128xf32, #tpu.memory_space<vmem>>, vector<1x8x128xf32>,
    %c0_20 = arith.constant 0 : index
    %c0_21 = arith.constant 0 : index
    %24 = vector.load %arg6[%c0_20, %c0_21] : memref<8x128xf32, #tpu.memory_space<vmem>>, vector<8x128xf32>
    tpu.vector_store %arg6[%c0_20, %c0_21], %19 {strides = array<i32>} : memref<8x128xf32, #tpu.memory_space<vmem>>, vector<8x128xf32>,
    %c1_i32 = arith.constant 1 : i32
    %c0_22 = arith.constant 0 : index
    %c0_23 = arith.constant 0 : index
    %25 = vector.load %arg6[%c0_22, %c0_23] : memref<8x128xf32, #tpu.memory_space<vmem>>, vector<8x128xf32>
    %cst_24 = arith.constant dense<0.000000e+00> : vector<8x128xf32>
    %26 = tpu.matmul %25, %12, %cst_24 {dimension_numbers = #tpu.dot_dimension_numbers<[1], [0], [0], [1], [0, 0, 1, 1], [], []>} : vector<8x128xf32>, vector<128x128xf32>, vector<8x128xf32> -> vector<8x128xf32>
    %27 = arith.index_cast %c1_i32 : i32 to index
    %c0_25 = arith.constant 0 : index
    %c0_26 = arith.constant 0 : index
    %28 = vector.load %arg5[%27, %c0_25, %c0_26] : memref<8x8x128xf32, #tpu.memory_space<vmem>>, vector<1x8x128xf32>
    %29 = vector.shape_cast %28 : vector<1x8x128xf32> to vector<8x128xf32>
    %30 = arith.addf %29, %26 : vector<8x128xf32>
    %31 = math.tanh %30 : vector<8x128xf32>
    %32 = arith.index_cast %c1_i32 : i32 to index
    %c0_27 = arith.constant 0 : index
    %c0_28 = arith.constant 0 : index
    %33 = vector.load %arg5[%32, %c0_27, %c0_28] : memref<8x8x128xf32, #tpu.memory_space<vmem>>, vector<1x8x128xf32>
    %34 = vector.shape_cast %33 : vector<1x8x128xf32> to vector<8x128xf32>
    %35 = vector.shape_cast %31 : vector<8x128xf32> to vector<1x8x128xf32>
    tpu.vector_store %arg5[%32, %c0_27, %c0_28], %35 {strides = array<i32>} : memref<8x8x128xf32, #tpu.memory_space<vmem>>, vector<1x8x128xf32>,
    %c0_29 = arith.constant 0 : index
    %c0_30 = arith.constant 0 : index
    %36 = vector.load %arg6[%c0_29, %c0_30] : memref<8x128xf32, #tpu.memory_space<vmem>>, vector<8x128xf32>
    tpu.vector_store %arg6[%c0_29, %c0_30], %31 {strides = array<i32>} : memref<8x128xf32, #tpu.memory_space<vmem>>, vector<8x128xf32>,
    %c2_i32 = arith.constant 2 : i32
    %c0_31 = arith.constant 0 : index
    %c0_32 = arith.constant 0 : index
    %37 = vector.load %arg6[%c0_31, %c0_32] : memref<8x128xf32, #tpu.memory_space<vmem>>, vector<8x128xf32>
    %cst_33 = arith.constant dense<0.000000e+00> : vector<8x128xf32>
    %38 = tpu.matmul %37, %12, %cst_33 {dimension_numbers = #tpu.dot_dimension_numbers<[1], [0], [0], [1], [0, 0, 1, 1], [], []>} : vector<8x128xf32>, vector<128x128xf32>, vector<8x128xf32> -> vector<8x128xf32>
    %39 = arith.index_cast %c2_i32 : i32 to index
    %c0_34 = arith.constant 0 : index
    %c0_35 = arith.constant 0 : index
    %40 = vector.load %arg5[%39, %c0_34, %c0_35] : memref<8x8x128xf32, #tpu.memory_space<vmem>>, vector<1x8x128xf32>
    %41 = vector.shape_cast %40 : vector<1x8x128xf32> to vector<8x128xf32>
    %42 = arith.addf %41, %38 : vector<8x128xf32>
    %43 = math.tanh %42 : vector<8x128xf32>
    %44 = arith.index_cast %c2_i32 : i32 to index
    %c0_36 = arith.constant 0 : index
    %c0_37 = arith.constant 0 : index
    %45 = vector.load %arg5[%44, %c0_36, %c0_37] : memref<8x8x128xf32, #tpu.memory_space<vmem>>, vector<1x8x128xf32>
    %46 = vector.shape_cast %45 : vector<1x8x128xf32> to vector<8x128xf32>
    %47 = vector.shape_cast %43 : vector<8x128xf32> to vector<1x8x128xf32>
    tpu.vector_store %arg5[%44, %c0_36, %c0_37], %47 {strides = array<i32>} : memref<8x8x128xf32, #tpu.memory_space<vmem>>, vector<1x8x128xf32>,
    %c0_38 = arith.constant 0 : index
    %c0_39 = arith.constant 0 : index
    %48 = vector.load %arg6[%c0_38, %c0_39] : memref<8x128xf32, #tpu.memory_space<vmem>>, vector<8x128xf32>
    tpu.vector_store %arg6[%c0_38, %c0_39], %43 {strides = array<i32>} : memref<8x128xf32, #tpu.memory_space<vmem>>, vector<8x128xf32>,
    %c3_i32 = arith.constant 3 : i32
    %c0_40 = arith.constant 0 : index
    %c0_41 = arith.constant 0 : index
    %49 = vector.load %arg6[%c0_40, %c0_41] : memref<8x128xf32, #tpu.memory_space<vmem>>, vector<8x128xf32>
    %cst_42 = arith.constant dense<0.000000e+00> : vector<8x128xf32>
    %50 = tpu.matmul %49, %12, %cst_42 {dimension_numbers = #tpu.dot_dimension_numbers<[1], [0], [0], [1], [0, 0, 1, 1], [], []>} : vector<8x128xf32>, vector<128x128xf32>, vector<8x128xf32> -> vector<8x128xf32>
    %51 = arith.index_cast %c3_i32 : i32 to index
    %c0_43 = arith.constant 0 : index
    %c0_44 = arith.constant 0 : index
    %52 = vector.load %arg5[%51, %c0_43, %c0_44] : memref<8x8x128xf32, #tpu.memory_space<vmem>>, vector<1x8x128xf32>
    %53 = vector.shape_cast %52 : vector<1x8x128xf32> to vector<8x128xf32>
    %54 = arith.addf %53, %50 : vector<8x128xf32>
    %55 = math.tanh %54 : vector<8x128xf32>
    %56 = arith.index_cast %c3_i32 : i32 to index
    %c0_45 = arith.constant 0 : index
    %c0_46 = arith.constant 0 : index
    %57 = vector.load %arg5[%56, %c0_45, %c0_46] : memref<8x8x128xf32, #tpu.memory_space<vmem>>, vector<1x8x128xf32>
    %58 = vector.shape_cast %57 : vector<1x8x128xf32> to vector<8x128xf32>
    %59 = vector.shape_cast %55 : vector<8x128xf32> to vector<1x8x128xf32>
    tpu.vector_store %arg5[%56, %c0_45, %c0_46], %59 {strides = array<i32>} : memref<8x8x128xf32, #tpu.memory_space<vmem>>, vector<1x8x128xf32>,
    %c0_47 = arith.constant 0 : index
    %c0_48 = arith.constant 0 : index
    %60 = vector.load %arg6[%c0_47, %c0_48] : memref<8x128xf32, #tpu.memory_space<vmem>>, vector<8x128xf32>
    tpu.vector_store %arg6[%c0_47, %c0_48], %55 {strides = array<i32>} : memref<8x128xf32, #tpu.memory_space<vmem>>, vector<8x128xf32>,
    %c4_i32 = arith.constant 4 : i32
    %c0_49 = arith.constant 0 : index
    %c0_50 = arith.constant 0 : index
    %61 = vector.load %arg6[%c0_49, %c0_50] : memref<8x128xf32, #tpu.memory_space<vmem>>, vector<8x128xf32>
    %cst_51 = arith.constant dense<0.000000e+00> : vector<8x128xf32>
    %62 = tpu.matmul %61, %12, %cst_51 {dimension_numbers = #tpu.dot_dimension_numbers<[1], [0], [0], [1], [0, 0, 1, 1], [], []>} : vector<8x128xf32>, vector<128x128xf32>, vector<8x128xf32> -> vector<8x128xf32>
    %63 = arith.index_cast %c4_i32 : i32 to index
    %c0_52 = arith.constant 0 : index
    %c0_53 = arith.constant 0 : index
    %64 = vector.load %arg5[%63, %c0_52, %c0_53] : memref<8x8x128xf32, #tpu.memory_space<vmem>>, vector<1x8x128xf32>
    %65 = vector.shape_cast %64 : vector<1x8x128xf32> to vector<8x128xf32>
    %66 = arith.addf %65, %62 : vector<8x128xf32>
    %67 = math.tanh %66 : vector<8x128xf32>
    %68 = arith.index_cast %c4_i32 : i32 to index
    %c0_54 = arith.constant 0 : index
    %c0_55 = arith.constant 0 : index
    %69 = vector.load %arg5[%68, %c0_54, %c0_55] : memref<8x8x128xf32, #tpu.memory_space<vmem>>, vector<1x8x128xf32>
    %70 = vector.shape_cast %69 : vector<1x8x128xf32> to vector<8x128xf32>
    %71 = vector.shape_cast %67 : vector<8x128xf32> to vector<1x8x128xf32>
    tpu.vector_store %arg5[%68, %c0_54, %c0_55], %71 {strides = array<i32>} : memref<8x8x128xf32, #tpu.memory_space<vmem>>, vector<1x8x128xf32>,
    %c0_56 = arith.constant 0 : index
    %c0_57 = arith.constant 0 : index
    %72 = vector.load %arg6[%c0_56, %c0_57] : memref<8x128xf32, #tpu.memory_space<vmem>>, vector<8x128xf32>
    tpu.vector_store %arg6[%c0_56, %c0_57], %67 {strides = array<i32>} : memref<8x128xf32, #tpu.memory_space<vmem>>, vector<8x128xf32>,
    %c5_i32 = arith.constant 5 : i32
    %c0_58 = arith.constant 0 : index
    %c0_59 = arith.constant 0 : index
    %73 = vector.load %arg6[%c0_58, %c0_59] : memref<8x128xf32, #tpu.memory_space<vmem>>, vector<8x128xf32>
    %cst_60 = arith.constant dense<0.000000e+00> : vector<8x128xf32>
    %74 = tpu.matmul %73, %12, %cst_60 {dimension_numbers = #tpu.dot_dimension_numbers<[1], [0], [0], [1], [0, 0, 1, 1], [], []>} : vector<8x128xf32>, vector<128x128xf32>, vector<8x128xf32> -> vector<8x128xf32>
    %75 = arith.index_cast %c5_i32 : i32 to index
    %c0_61 = arith.constant 0 : index
    %c0_62 = arith.constant 0 : index
    %76 = vector.load %arg5[%75, %c0_61, %c0_62] : memref<8x8x128xf32, #tpu.memory_space<vmem>>, vector<1x8x128xf32>
    %77 = vector.shape_cast %76 : vector<1x8x128xf32> to vector<8x128xf32>
    %78 = arith.addf %77, %74 : vector<8x128xf32>
    %79 = math.tanh %78 : vector<8x128xf32>
    %80 = arith.index_cast %c5_i32 : i32 to index
    %c0_63 = arith.constant 0 : index
    %c0_64 = arith.constant 0 : index
    %81 = vector.load %arg5[%80, %c0_63, %c0_64] : memref<8x8x128xf32, #tpu.memory_space<vmem>>, vector<1x8x128xf32>
    %82 = vector.shape_cast %81 : vector<1x8x128xf32> to vector<8x128xf32>
    %83 = vector.shape_cast %79 : vector<8x128xf32> to vector<1x8x128xf32>
    tpu.vector_store %arg5[%80, %c0_63, %c0_64], %83 {strides = array<i32>} : memref<8x8x128xf32, #tpu.memory_space<vmem>>, vector<1x8x128xf32>,
    %c0_65 = arith.constant 0 : index
    %c0_66 = arith.constant 0 : index
    %84 = vector.load %arg6[%c0_65, %c0_66] : memref<8x128xf32, #tpu.memory_space<vmem>>, vector<8x128xf32>
    tpu.vector_store %arg6[%c0_65, %c0_66], %79 {strides = array<i32>} : memref<8x128xf32, #tpu.memory_space<vmem>>, vector<8x128xf32>,
    %c6_i32 = arith.constant 6 : i32
    %c0_67 = arith.constant 0 : index
    %c0_68 = arith.constant 0 : index
    %85 = vector.load %arg6[%c0_67, %c0_68] : memref<8x128xf32, #tpu.memory_space<vmem>>, vector<8x128xf32>
    %cst_69 = arith.constant dense<0.000000e+00> : vector<8x128xf32>
    %86 = tpu.matmul %85, %12, %cst_69 {dimension_numbers = #tpu.dot_dimension_numbers<[1], [0], [0], [1], [0, 0, 1, 1], [], []>} : vector<8x128xf32>, vector<128x128xf32>, vector<8x128xf32> -> vector<8x128xf32>
    %87 = arith.index_cast %c6_i32 : i32 to index
    %c0_70 = arith.constant 0 : index
    %c0_71 = arith.constant 0 : index
    %88 = vector.load %arg5[%87, %c0_70, %c0_71] : memref<8x8x128xf32, #tpu.memory_space<vmem>>, vector<1x8x128xf32>
    %89 = vector.shape_cast %88 : vector<1x8x128xf32> to vector<8x128xf32>
    %90 = arith.addf %89, %86 : vector<8x128xf32>
    %91 = math.tanh %90 : vector<8x128xf32>
    %92 = arith.index_cast %c6_i32 : i32 to index
    %c0_72 = arith.constant 0 : index
    %c0_73 = arith.constant 0 : index
    %93 = vector.load %arg5[%92, %c0_72, %c0_73] : memref<8x8x128xf32, #tpu.memory_space<vmem>>, vector<1x8x128xf32>
    %94 = vector.shape_cast %93 : vector<1x8x128xf32> to vector<8x128xf32>
    %95 = vector.shape_cast %91 : vector<8x128xf32> to vector<1x8x128xf32>
    tpu.vector_store %arg5[%92, %c0_72, %c0_73], %95 {strides = array<i32>} : memref<8x8x128xf32, #tpu.memory_space<vmem>>, vector<1x8x128xf32>,
    %c0_74 = arith.constant 0 : index
    %c0_75 = arith.constant 0 : index
    %96 = vector.load %arg6[%c0_74, %c0_75] : memref<8x128xf32, #tpu.memory_space<vmem>>, vector<8x128xf32>
    tpu.vector_store %arg6[%c0_74, %c0_75], %91 {strides = array<i32>} : memref<8x128xf32, #tpu.memory_space<vmem>>, vector<8x128xf32>,
    %c7_i32 = arith.constant 7 : i32
    %c0_76 = arith.constant 0 : index
    %c0_77 = arith.constant 0 : index
    %97 = vector.load %arg6[%c0_76, %c0_77] : memref<8x128xf32, #tpu.memory_space<vmem>>, vector<8x128xf32>
    %cst_78 = arith.constant dense<0.000000e+00> : vector<8x128xf32>
    %98 = tpu.matmul %97, %12, %cst_78 {dimension_numbers = #tpu.dot_dimension_numbers<[1], [0], [0], [1], [0, 0, 1, 1], [], []>} : vector<8x128xf32>, vector<128x128xf32>, vector<8x128xf32> -> vector<8x128xf32>
    %99 = arith.index_cast %c7_i32 : i32 to index
    %c0_79 = arith.constant 0 : index
    %c0_80 = arith.constant 0 : index
    %100 = vector.load %arg5[%99, %c0_79, %c0_80] : memref<8x8x128xf32, #tpu.memory_space<vmem>>, vector<1x8x128xf32>
    %101 = vector.shape_cast %100 : vector<1x8x128xf32> to vector<8x128xf32>
    %102 = arith.addf %101, %98 : vector<8x128xf32>
    %103 = math.tanh %102 : vector<8x128xf32>
    %104 = arith.index_cast %c7_i32 : i32 to index
    %c0_81 = arith.constant 0 : index
    %c0_82 = arith.constant 0 : index
    %105 = vector.load %arg5[%104, %c0_81, %c0_82] : memref<8x8x128xf32, #tpu.memory_space<vmem>>, vector<1x8x128xf32>
    %106 = vector.shape_cast %105 : vector<1x8x128xf32> to vector<8x128xf32>
    %107 = vector.shape_cast %103 : vector<8x128xf32> to vector<1x8x128xf32>
    tpu.vector_store %arg5[%104, %c0_81, %c0_82], %107 {strides = array<i32>} : memref<8x8x128xf32, #tpu.memory_space<vmem>>, vector<1x8x128xf32>,
    %c0_83 = arith.constant 0 : index
    %c0_84 = arith.constant 0 : index
    %108 = vector.load %arg6[%c0_83, %c0_84] : memref<8x128xf32, #tpu.memory_space<vmem>>, vector<8x128xf32>
    tpu.vector_store %arg6[%c0_83, %c0_84], %103 {strides = array<i32>} : memref<8x128xf32, #tpu.memory_space<vmem>>, vector<8x128xf32>,
    %c8_i32 = arith.constant 8 : i32
    return
  }
  func.func @transform_0(%arg0: i32) -> (i32, i32, i32) {
    %c0_i32 = arith.constant 0 : i32
    %c0_i32_0 = arith.constant 0 : i32
    %c0_i32_1 = arith.constant 0 : i32
    return %arg0, %c0_i32, %c0_i32_0 : i32, i32, i32
  }
  func.func @transform_1(%arg0: i32) -> (i32, i32) {
    %c0_i32 = arith.constant 0 : i32
    %c0_i32_0 = arith.constant 0 : i32
    %c0_i32_1 = arith.constant 0 : i32
    return %c0_i32, %c0_i32_0 : i32, i32
  }
  func.func @transform_2(%arg0: i32) -> (i32, i32) {
    %c0_i32 = arith.constant 0 : i32
    %c0_i32_0 = arith.constant 0 : i32
    %c0_i32_1 = arith.constant 0 : i32
    return %c0_i32, %c0_i32_0 : i32, i32
  }
  func.func @transform_3(%arg0: i32) -> (i32, i32) {
    %c0_i32 = arith.constant 0 : i32
    %c0_i32_0 = arith.constant 0 : i32
    %c0_i32_1 = arith.constant 0 : i32
    return %c0_i32, %c0_i32_0 : i32, i32
  }
  func.func @transform_4(%arg0: i32) -> (i32, i32, i32) {
    %c0_i32 = arith.constant 0 : i32
    %c0_i32_0 = arith.constant 0 : i32
    %c0_i32_1 = arith.constant 0 : i32
    return %arg0, %c0_i32, %c0_i32_0 : i32, i32, i32
  }
}

</mosaic_0001>

<bundles_post_ra>
// kernel: tpu_custom_call.1
= control target key start
LH: loop header
LB: loop body
LE: loop exit
PB: predicated region body
PF: predicated region fallthrough
CT: control target
= control target key end

     0   :  { %9 = vsyncpa [#allocation4], 0  ;;  %s1929_s0 = inlined_call_operand.hbm [shape: f32[8,8,16], index: 0, kind: input, shape index: {}]   ;;  %s1930_s1 = inlined_call_operand.hbm [shape: f32[16,128], index: 1, kind: input, shape index: {}]   ;;  %s1931_s2 = inlined_call_operand.vmem [shape: f32[1,128], index: 2, kind: input, shape index: {}]   ;;  %s1932_s3 = inlined_call_operand.hbm [shape: f32[128,128], index: 3, kind: input, shape index: {}]   ;;  %s1933_s4 = inlined_call_operand.hbm [shape: f32[8,8,128], index: 4, kind: output, shape index: {}]  }
   0x1   :  { %10 = vsyncpa [#allocation7], 0 }
   0x2   :  { %11 = vsyncpa [#allocation5], 0  ;;  %s1634_s15 = smov [#allocation6]   ;;  %s1635_s17 = smov [#allocation3]  }
   0x3   :  { %s29_s16 = sshll.u32 %s1634_s15, 4  ;;  %s17_s18 = sshll.u32 %s1635_s17, 4  ;;  %s30_s16 = int_to_ptr.vmem [resolvable:$true] %s29_s16  ;;  %s1668_s18 = int_to_ptr.vmem [resolvable:$true] %s17_s18 }
   0x4   :  { %s1540_s21 = scalar_lea.hbm %s1930_s1, 256 }
   0x5   :  { %p1541_p0 = scmp.ne.s32.totalorder %s1930_s1, %s1540_s21  ;;  %p1544_p1 = scmp.lt.u32.totalorder %s1540_s21, %s1930_s1 }
   0x7   :  { %p1546_p2 = pnand %p1544_p1, %p1541_p0 }
   0x9   :  { %1549 = shalt.err (!%p1546_p2)
}
   0xa   :  { %s1550_s26 = scalar_lea.vmem %s30_s16, 256  ;;  %p1555_p4 = scmp.lt.s32.totalorder %s30_s16, %s30_s16 }
   0xb   :  { %p1551_p3 = scmp.ne.s32.totalorder %s30_s16, %s1550_s26  ;;  %p1556_p5 = scmp.lt.s32.totalorder %s1550_s26, %s1550_s26 }
   0xd   :  { %p1557_p6 = por %p1556_p5, %p1555_p4 }
   0xf   :  { %p1558_p7 = pnand %p1557_p6, %p1551_p3 }
  0x11   :  { %1561 = shalt.err (!%p1558_p7)
}
  0x12   :  { %s1636_s27 = smov 128   ;;  %s1637_s28 = smov 8  }
  0x13   :  { %35 = dma.hbm_to_vmem [thread:$0]  %s1930_s1, 256, %s30_s16, [#allocation7], %s1636_s27, %s1636_s27, %s1637_s28  }
  0x14   :  { %s1562_s7 = scalar_lea.hbm %s1929_s0, 1024 }
  0x15   :  { %p1563_p8 = scmp.ne.s32.totalorder %s1929_s0, %s1562_s7  ;;  %p1566_p9 = scmp.lt.u32.totalorder %s1562_s7, %s1929_s0 }
  0x17   :  { %p1568_p10 = pnand %p1566_p9, %p1563_p8 }
  0x19   :  { %1571 = shalt.err (!%p1568_p10)
}
  0x1a   :  { %s1572_s12 = scalar_lea.vmem %s1668_s18, 1024  ;;  %p1577_p12 = scmp.lt.s32.totalorder %s1668_s18, %s1668_s18 }
  0x1b   :  { %p1573_p11 = scmp.ne.s32.totalorder %s1668_s18, %s1572_s12  ;;  %p1578_p13 = scmp.lt.s32.totalorder %s1572_s12, %s1572_s12 }
  0x1d   :  { %p1579_p0 = por %p1578_p13, %p1577_p12 }
  0x1f   :  { %p1580_p1 = pnand %p1579_p0, %p1573_p11 }
  0x21   :  { %1583 = shalt.err (!%p1580_p1)
}
  0x22   :  { %23 = dma.hbm_to_vmem [thread:$0]  %s1929_s0, 1024, %s1668_s18, [#allocation4], %s1636_s27, %s1636_s27, %s1637_s28  }
  0x23   :  { %s1638_s14 = smov [#allocation8]   ;;  %s1584_s19 = scalar_lea.hbm %s1932_s3, 2048 }
  0x24   :  { %s43_s15 = sshll.u32 %s1638_s14, 4  ;;  %p1585_p2 = scmp.ne.s32.totalorder %s1932_s3, %s1584_s19  ;;  %s44_s15 = int_to_ptr.vmem [resolvable:$true] %s43_s15 }
  0x25   :  { %p1588_p3 = scmp.lt.u32.totalorder %s1584_s19, %s1932_s3 }
  0x27   :  { %p1590_p4 = pnand %p1588_p3, %p1585_p2 }
  0x29   :  { %1593 = shalt.err (!%p1590_p4)
}
  0x2a   :  { %s1594_s24 = scalar_lea.vmem %s44_s15, 2048  ;;  %p1599_p6 = scmp.lt.s32.totalorder %s44_s15, %s44_s15 }
  0x2b   :  { %p1595_p5 = scmp.ne.s32.totalorder %s44_s15, %s1594_s24  ;;  %p1600_p7 = scmp.lt.s32.totalorder %s1594_s24, %s1594_s24 }
  0x2d   :  { %p1601_p8 = por %p1600_p7, %p1599_p6 }
  0x2f   :  { %p1602_p9 = pnand %p1601_p8, %p1595_p5 }
  0x31   :  { %1605 = shalt.err (!%p1602_p9)
}
  0x32   :  { %49 = dma.hbm_to_vmem [thread:$0]  %s1932_s3, 2048, %s44_s15, [#allocation7], %s1636_s27, %s1636_s27, %s1637_s28  }
  0x33   :  { %1628 = dma.done.wait [#allocation4], 1024  }
  0x34   :  { %1629 = vsyncadd [#allocation4], 4294966272 }
  0x35   :  { %1630 = dma.done.wait [#allocation7], 2304  }
  0x36   :  { %1631 = vsyncadd [#allocation7], 4294964992  ;;  %v1639_v0 = vmov 0.0|0.0   ;;  %vm1640_vm0 = vmmov 0   ;;  %v1641_v1 = vmov 0.0   ;;  %v219_v2 = vld [vmem:[#allocation8] sm:$0xff] }
  0x37   :  { %1323 = vmatprep.subr.bf16.mxu1 %v1639_v0  ;;  %1071 = vmatprep.mubr.msk.f32.mxu1 %vm1640_vm0, %v1641_v1  ;;  %v220_v3 = vld [vmem:[#allocation8 + $0x8] sm:$0xff]  ;;  %v221_v4 = vld [vmem:[#allocation8 + $0x10] sm:$0xff]  ;;  %v222_v6 = vld [vmem:[#allocation8 + $0x18] sm:$0xff]  ;;  %vm81_vm1 = vcmask 130048  }
  0x38   :  { %v1723_v5 = vpack.c.bf16 %v220_v3, %v219_v2  ;;  %v72_v7 = vld [vmem:[#allocation6] sm:$0xff]  ;;  %v1726_v8 = vpack.c.bf16 %v222_v6, %v221_v4  ;;  %v73_v9 = vld [vmem:[#allocation6 + $0x8] sm:$0xff]  ;;  %v223_v10 = vld [vmem:[#allocation8 + $0x20] sm:$0xff] }
  0x39   :  { %v224_v11 = vld [vmem:[#allocation8 + $0x28] sm:$0xff]  ;;  %v1319_v12 = vpack.c.bf16 %v73_v9, %v72_v7  ;;  %v64_v13 = vld [vmem:[#allocation3] sm:$0xff]  ;;  %v65_v15 = vld [vmem:[#allocation3 + $0x8] sm:$0xff] }
  0x3a   :  { %1325 = vmatpush3.bf16.msra.mxu1 %v1723_v5  ;;  %1027 = vmatprep.mubr.msk.f32.mxu0 %vm81_vm1, %v64_v13  ;;  %v1731_v14 = vpack.c.bf16 %v224_v11, %v223_v10  ;;  %v225_v16 = vld [vmem:[#allocation8 + $0x30] sm:$0xff]  ;;  %v226_v17 = vld [vmem:[#allocation8 + $0x38] sm:$0xff]  ;;  %v227_v19 = vld [vmem:[#allocation8 + $0x40] sm:$0xff] }
  0x3b   :  { %1326 = vmatprep.subr.bf16.mxu1 %v1639_v0  ;;  %1320 = vmatprep.subr.bf16.mxu0 %v1319_v12  ;;  %v1737_v18 = vpack.c.bf16 %v226_v17, %v225_v16  ;;  %v228_v20 = vld [vmem:[#allocation8 + $0x48] sm:$0xff]  ;;  %v229_v22 = vld [vmem:[#allocation8 + $0x50] sm:$0xff]  ;;  %v230_v23 = vld [vmem:[#allocation8 + $0x58] sm:$0xff] }
  0x3c   :  { %1322 = vmatpush3.bf16.msra.mxu0 %v1319_v12  ;;  %v1743_v21 = vpack.c.bf16 %v228_v20, %v227_v19  ;;  %v1749_v24 = vpack.c.bf16 %v230_v23, %v229_v22  ;;  %v231_v25 = vld [vmem:[#allocation8 + $0x60] sm:$0xff]  ;;  %v232_v26 = vld [vmem:[#allocation8 + $0x68] sm:$0xff]  ;;  %v233_v28 = vld [vmem:[#allocation8 + $0x70] sm:$0xff] }
  0x3d   :  { %1347 = vmatprep.subr.bf16.mxu0 %v1639_v0  ;;  %v1755_v27 = vpack.c.bf16 %v232_v26, %v231_v25  ;;  %v234_v29 = vld [vmem:[#allocation8 + $0x78] sm:$0xff]  ;;  %v66_v31 = vld [vmem:[#allocation3 + $0x10] sm:$0xff]  ;;  %v67_v32 = vld [vmem:[#allocation3 + $0x18] sm:$0xff] }
  0x3e   :  { %1328 = vmatpush3.bf16.msra.mxu1 %v1726_v8  ;;  %v1761_v30 = vpack.c.bf16 %v234_v29, %v233_v28  ;;  %v68_v33 = vld [vmem:[#allocation3 + $0x20] sm:$0xff]  ;;  %v69_v34 = vld [vmem:[#allocation3 + $0x28] sm:$0xff]  ;;  %v70_v35 = vld [vmem:[#allocation3 + $0x30] sm:$0xff] }
  0x3f   :  { %1329 = vmatprep.subr.bf16.mxu1 %v1639_v0  ;;  %1028 = vmatmul.mubr.msk.f32.vlgmr.msra.gmra.mrb[0].mxu0 %vm81_vm1, %v65_v15  ;;  %v71_v36 = vld [vmem:[#allocation3 + $0x38] sm:$0xff]  ;;  %v1804_v39 = vld [vmem:[%s1931_s2] ss:$0 sm:$0xff]  ;;  %s1642_s2 = smov [#allocation9]  }
  0x40   :  { %1349 = vmatpush3.bf16.msra.mxu0 %v1723_v5  ;;  %1030 = vmatprep.mubr.msk.f32.mxu0 %vm81_vm1, %v66_v31  ;;  %s855_s26 = sshll.u32 %s1642_s2, 4  ;;  %s856_s26 = int_to_ptr.vmem [resolvable:$true] %s855_s26 }
  0x41   :  { %1350 = vmatprep.subr.bf16.mxu0 %v1639_v0  ;;  %s1606_s29 = scalar_lea.vmem %s856_s26, 1024  ;;  %p1611_p11 = scmp.lt.s32.totalorder %s856_s26, %s856_s26 }
  0x42   :  { %1331 = vmatpush3.bf16.msra.mxu1 %v1731_v14  ;;  %p1607_p10 = scmp.ne.s32.totalorder %s856_s26, %s1606_s29  ;;  %p1612_p12 = scmp.lt.s32.totalorder %s1606_s29, %s1606_s29 }
  0x43   :  { %1332 = vmatprep.subr.bf16.mxu1 %v1639_v0  ;;  %1031 = vmatmul.mubr.msk.f32.gmra.mrb[2].mxu0 %vm81_vm1, %v67_v32 }
  0x44   :  { %1352 = vmatpush3.bf16.msra.mxu0 %v1726_v8  ;;  %1033 = vmatprep.mubr.msk.f32.mxu0 %vm81_vm1, %v68_v33  ;;  %p1613_p13 = por %p1612_p12, %p1611_p11 }
  0x45   :  { %1353 = vmatprep.subr.bf16.mxu0 %v1639_v0 }
  0x46   :  { %1334 = vmatpush3.bf16.msra.mxu1 %v1737_v18  ;;  %p1614_p0 = pnand %p1613_p13, %p1607_p10 }
  0x47   :  { %1335 = vmatprep.subr.bf16.mxu1 %v1639_v0  ;;  %1034 = vmatmul.mubr.msk.f32.gmra.mrb[4].mxu0 %vm81_vm1, %v69_v34 }
  0x48   :  { %1355 = vmatpush3.bf16.msra.mxu0 %v1731_v14  ;;  %1036 = vmatprep.mubr.msk.f32.mxu0 %vm81_vm1, %v70_v35 }
  0x49   :  { %1356 = vmatprep.subr.bf16.mxu0 %v1639_v0 }
  0x4a   :  { %1337 = vmatpush3.bf16.msra.mxu1 %v1743_v21 }
  0x4b   :  { %1338 = vmatprep.subr.bf16.mxu1 %v1639_v0  ;;  %1037 = vmatmul.mubr.msk.f32.gmra.mrb[6].mxu0 %vm81_vm1, %v71_v36 }
  0x4c   :  { %1358 = vmatpush3.bf16.msra.mxu0 %v1737_v18  ;;  %1106 = vmatprep.mubr.msk.f32.mxu0 %vm1640_vm0, %v1641_v1 }
  0x4d   :  { %1359 = vmatprep.subr.bf16.mxu0 %v1639_v0 }
  0x4e   :  { %1340 = vmatpush3.bf16.msra.mxu1 %v1749_v24 }
  0x4f   :  { %1341 = vmatprep.subr.bf16.mxu1 %v1639_v0 }
  0x50   :  { %1361 = vmatpush3.bf16.msra.mxu0 %v1743_v21 }
  0x51   :  { %1362 = vmatprep.subr.bf16.mxu0 %v1639_v0 }
  0x52   :  { %1343 = vmatpush3.bf16.msra.mxu1 %v1755_v27 }
  0x53   :  { %1344 = vmatprep.subr.bf16.mxu1 %v1639_v0 }
  0x54   :  { %1364 = vmatpush3.bf16.msra.mxu0 %v1749_v24 }
  0x55   :  { %1365 = vmatprep.subr.bf16.mxu0 %v1639_v0 }
  0x56   :  { %1346 = vmatpush3.bf16.msra.mxu1 %v1761_v30 }
  0x57   :  { %1371 = vmatprep.subr.bf16.mxu1 %v1639_v0 }
  0x58   :  { %1367 = vmatpush3.bf16.msra.mxu0 %v1755_v27 }
  0x59   :  { %1072 = vmatmul.mubr.f32.vlgmr.msra.gmra.mrb[0].mxu1 %v1641_v1  ;;  %1368 = vmatprep.subr.bf16.mxu0 %v1639_v0 }
  0x5a   :  { %1373 = vmatpush3.bf16.msra.mxu1 %v1723_v5  ;;  %1141 = vmatprep.mubr.msk.f32.mxu1 %vm1640_vm0, %v1641_v1 }
  0x5b   :  { %1374 = vmatprep.subr.bf16.mxu1 %v1639_v0 }
  0x5c   :  { %1370 = vmatpush3.bf16.msra.mxu0 %v1761_v30 }
  0x5d   :  { %1395 = vmatprep.subr.bf16.mxu0 %v1639_v0 }
  0x5e   :  { %1376 = vmatpush3.bf16.msra.mxu1 %v1726_v8 }
  0x5f   :  { %1377 = vmatprep.subr.bf16.mxu1 %v1639_v0 }
  0x62   :  { %1379 = vmatpush3.bf16.msra.mxu1 %v1731_v14 }
  0x63   :  { %1380 = vmatprep.subr.bf16.mxu1 %v1639_v0 }
  0x66   :  { %1382 = vmatpush3.bf16.msra.mxu1 %v1737_v18 }
  0x67   :  { %1383 = vmatprep.subr.bf16.mxu1 %v1639_v0 }
  0x6a   :  { %1385 = vmatpush3.bf16.msra.mxu1 %v1743_v21 }
  0x6b   :  { %1386 = vmatprep.subr.bf16.mxu1 %v1639_v0 }
  0x6e   :  { %1388 = vmatpush3.bf16.msra.mxu1 %v1749_v24 }
  0x6f   :  { %1389 = vmatprep.subr.bf16.mxu1 %v1639_v0 }
  0x72   :  { %1391 = vmatpush3.bf16.msra.mxu1 %v1755_v27 }
  0x73   :  { %1392 = vmatprep.subr.bf16.mxu1 %v1639_v0 }
  0x76   :  { %1394 = vmatpush3.bf16.msra.mxu1 %v1761_v30 }
  0x77   :  { %1419 = vmatprep.subr.bf16.mxu1 %v1639_v0 }
 0x112   :  { %v1029_v37 = vpop.f32.mrb[0].mxu0 }
 0x113   :  { %v172_v38 = vpop.f32.mrb[1].mxu0  ;;  %v178_v51 = vadd.f32 %v1029_v37, %v1804_v39 }
 0x114   :  { %v173_v40 = vadd.f32 %v1804_v39, %v172_v38 }
 0x116   :  { %v1032_v45 = vpop.f32.mrb[2].mxu0 }
 0x117   :  { %v182_v46 = vpop.f32.mrb[3].mxu0  ;;  %v188_v61 = vadd.f32 %v1032_v45, %v1804_v39 }
 0x118   :  { %v183_v56 = vadd.f32 %v1804_v39, %v182_v46 }
 0x11a   :  { %v1825_v47 = vpop.f32.mrb[4].mxu0 }
 0x11b   :  { %v1827_v48 = vpop.f32.mrb[5].mxu0 }
 0x11c   :  { %v193_v4 = vadd.f32 %v1804_v39, %v1827_v48 }
 0x11e   :  { %v1829_v49 = vpop.f32.mrb[6].mxu0 }
 0x11f   :  { %v1831_v50 = vpop.f32.mrb[7].mxu0  ;;  %v208_v17 = vadd.f32 %v1829_v49, %v1804_v39 }
 0x120   :  { %v203_v13 = vadd.f32 %v1804_v39, %v1831_v50 }
 0x12c   :  { %v302_v41 = vpop.f32.mrb[0].mxu1 }
 0x12d   :  { %v307_v42 = vadd.f32 %v302_v41, %v173_v40  ;;  %v1073_v43 = vpop.f32.mrb[1].mxu1 }
 0x12f   :  { %1524 = vtanh.f32 %v307_v42 }
 0x139   :  { %v1525_v44 = vpop.eup %1524 }
 0x13a   :  { %309 = vst [vmem:[#allocation9] sm:$0xff] %v1525_v44  ;;  %1107 = vmatmul.mubr.f32.vlgmr.msra.gmra.mrb[8].mxu0 %v1525_v44 }
 0x13b   :  { %1397 = vmatpush3.bf16.msra.mxu0 %v1723_v5  ;;  %1176 = vmatprep.mubr.msk.f32.mxu0 %vm1640_vm0, %v1641_v1 }
 0x13c   :  { %1398 = vmatprep.subr.bf16.mxu0 %v1639_v0 }
 0x13f   :  { %1400 = vmatpush3.bf16.msra.mxu0 %v1726_v8 }
 0x140   :  { %1401 = vmatprep.subr.bf16.mxu0 %v1639_v0 }
 0x143   :  { %1403 = vmatpush3.bf16.msra.mxu0 %v1731_v14 }
 0x144   :  { %1404 = vmatprep.subr.bf16.mxu0 %v1639_v0 }
 0x147   :  { %1406 = vmatpush3.bf16.msra.mxu0 %v1737_v18 }
 0x148   :  { %1407 = vmatprep.subr.bf16.mxu0 %v1639_v0 }
 0x14b   :  { %1409 = vmatpush3.bf16.msra.mxu0 %v1743_v21 }
 0x14c   :  { %1410 = vmatprep.subr.bf16.mxu0 %v1639_v0 }
 0x14f   :  { %1412 = vmatpush3.bf16.msra.mxu0 %v1749_v24 }
 0x150   :  { %1413 = vmatprep.subr.bf16.mxu0 %v1639_v0 }
 0x153   :  { %1415 = vmatpush3.bf16.msra.mxu0 %v1755_v27 }
 0x154   :  { %1416 = vmatprep.subr.bf16.mxu0 %v1639_v0 }
 0x157   :  { %1418 = vmatpush3.bf16.msra.mxu0 %v1761_v30 }
 0x158   :  { %1443 = vmatprep.subr.bf16.mxu0 %v1639_v0 }
 0x20d   :  { %v378_v52 = vpop.f32.mrb[8].mxu0 }
 0x20e   :  { %v384_v53 = vadd.f32 %v378_v52, %v178_v51  ;;  %v1108_v54 = vpop.f32.mrb[9].mxu0 }
 0x210   :  { %1526 = vtanh.f32 %v384_v53 }
 0x21a   :  { %v1527_v55 = vpop.eup %1526 }
 0x21b   :  { %386 = vst [vmem:[#allocation9 + $0x8] sm:$0xff] %v1527_v55  ;;  %1142 = vmatmul.mubr.f32.vlgmr.msra.gmra.mrb[2].mxu1 %v1527_v55 }
 0x21c   :  { %1421 = vmatpush3.bf16.msra.mxu1 %v1723_v5  ;;  %1211 = vmatprep.mubr.msk.f32.mxu1 %vm1640_vm0, %v1641_v1 }
 0x21d   :  { %1422 = vmatprep.subr.bf16.mxu1 %v1639_v0 }
 0x220   :  { %1424 = vmatpush3.bf16.msra.mxu1 %v1726_v8 }
 0x221   :  { %1425 = vmatprep.subr.bf16.mxu1 %v1639_v0 }
 0x224   :  { %1427 = vmatpush3.bf16.msra.mxu1 %v1731_v14 }
 0x225   :  { %1428 = vmatprep.subr.bf16.mxu1 %v1639_v0 }
 0x228   :  { %1430 = vmatpush3.bf16.msra.mxu1 %v1737_v18 }
 0x229   :  { %1431 = vmatprep.subr.bf16.mxu1 %v1639_v0 }
 0x22c   :  { %1433 = vmatpush3.bf16.msra.mxu1 %v1743_v21 }
 0x22d   :  { %1434 = vmatprep.subr.bf16.mxu1 %v1639_v0 }
 0x230   :  { %1436 = vmatpush3.bf16.msra.mxu1 %v1749_v24 }
 0x231   :  { %1437 = vmatprep.subr.bf16.mxu1 %v1639_v0 }
 0x234   :  { %1439 = vmatpush3.bf16.msra.mxu1 %v1755_v27 }
 0x235   :  { %1440 = vmatprep.subr.bf16.mxu1 %v1639_v0 }
 0x238   :  { %1442 = vmatpush3.bf16.msra.mxu1 %v1761_v30 }
 0x239   :  { %1467 = vmatprep.subr.bf16.mxu1 %v1639_v0 }
 0x2ee   :  { %v455_v57 = vpop.f32.mrb[2].mxu1 }
 0x2ef   :  { %v461_v58 = vadd.f32 %v455_v57, %v183_v56  ;;  %v1143_v59 = vpop.f32.mrb[3].mxu1 }
 0x2f1   :  { %1528 = vtanh.f32 %v461_v58 }
 0x2fb   :  { %v1529_v60 = vpop.eup %1528 }
 0x2fc   :  { %463 = vst [vmem:[#allocation9 + $0x10] sm:$0xff] %v1529_v60  ;;  %1177 = vmatmul.mubr.f32.vlgmr.msra.gmra.mrb[10].mxu0 %v1529_v60 }
 0x2fd   :  { %1445 = vmatpush3.bf16.msra.mxu0 %v1723_v5  ;;  %1246 = vmatprep.mubr.msk.f32.mxu0 %vm1640_vm0, %v1641_v1 }
 0x2fe   :  { %1446 = vmatprep.subr.bf16.mxu0 %v1639_v0 }
 0x301   :  { %1448 = vmatpush3.bf16.msra.mxu0 %v1726_v8 }
 0x302   :  { %1449 = vmatprep.subr.bf16.mxu0 %v1639_v0 }
 0x305   :  { %1451 = vmatpush3.bf16.msra.mxu0 %v1731_v14 }
 0x306   :  { %1452 = vmatprep.subr.bf16.mxu0 %v1639_v0 }
 0x309   :  { %1454 = vmatpush3.bf16.msra.mxu0 %v1737_v18 }
 0x30a   :  { %1455 = vmatprep.subr.bf16.mxu0 %v1639_v0 }
 0x30d   :  { %1457 = vmatpush3.bf16.msra.mxu0 %v1743_v21 }
 0x30e   :  { %1458 = vmatprep.subr.bf16.mxu0 %v1639_v0 }
 0x311   :  { %1460 = vmatpush3.bf16.msra.mxu0 %v1749_v24 }
 0x312   :  { %1461 = vmatprep.subr.bf16.mxu0 %v1639_v0 }
 0x315   :  { %1463 = vmatpush3.bf16.msra.mxu0 %v1755_v27 }
 0x316   :  { %1464 = vmatprep.subr.bf16.mxu0 %v1639_v0 }
 0x319   :  { %1466 = vmatpush3.bf16.msra.mxu0 %v1761_v30 }
 0x31a   :  { %1491 = vmatprep.subr.bf16.mxu0 %v1639_v0 }
 0x3cf   :  { %v532_v62 = vpop.f32.mrb[10].mxu0 }
 0x3d0   :  { %v538_v63 = vadd.f32 %v532_v62, %v188_v61  ;;  %v1178_v2 = vpop.f32.mrb[11].mxu0 }
 0x3d2   :  { %1530 = vtanh.f32 %v538_v63 }
 0x3dc   :  { %v1531_v3 = vpop.eup %1530 }
 0x3dd   :  { %540 = vst [vmem:[#allocation9 + $0x18] sm:$0xff] %v1531_v3  ;;  %1212 = vmatmul.mubr.f32.vlgmr.msra.gmra.mrb[4].mxu1 %v1531_v3 }
 0x3de   :  { %1469 = vmatpush3.bf16.msra.mxu1 %v1723_v5  ;;  %1281 = vmatprep.mubr.msk.f32.mxu1 %vm1640_vm0, %v1641_v1 }
 0x3df   :  { %1470 = vmatprep.subr.bf16.mxu1 %v1639_v0 }
 0x3e2   :  { %1472 = vmatpush3.bf16.msra.mxu1 %v1726_v8 }
 0x3e3   :  { %1473 = vmatprep.subr.bf16.mxu1 %v1639_v0 }
 0x3e6   :  { %1475 = vmatpush3.bf16.msra.mxu1 %v1731_v14 }
 0x3e7   :  { %1476 = vmatprep.subr.bf16.mxu1 %v1639_v0 }
 0x3ea   :  { %1478 = vmatpush3.bf16.msra.mxu1 %v1737_v18 }
 0x3eb   :  { %1479 = vmatprep.subr.bf16.mxu1 %v1639_v0 }
 0x3ee   :  { %1481 = vmatpush3.bf16.msra.mxu1 %v1743_v21 }
 0x3ef   :  { %1482 = vmatprep.subr.bf16.mxu1 %v1639_v0 }
 0x3f2   :  { %1484 = vmatpush3.bf16.msra.mxu1 %v1749_v24 }
 0x3f3   :  { %1485 = vmatprep.subr.bf16.mxu1 %v1639_v0 }
 0x3f6   :  { %1487 = vmatpush3.bf16.msra.mxu1 %v1755_v27 }
 0x3f7   :  { %1488 = vmatprep.subr.bf16.mxu1 %v1639_v0 }
 0x3fa   :  { %1490 = vmatpush3.bf16.msra.mxu1 %v1761_v30 }
 0x4b0   :  { %v609_v6 = vpop.f32.mrb[4].mxu1 }
 0x4b1   :  { %v615_v7 = vadd.f32 %v609_v6, %v193_v4  ;;  %v1213_v9 = vpop.f32.mrb[5].mxu1 }
 0x4b3   :  { %1532 = vtanh.f32 %v615_v7 }
 0x4bd   :  { %v1533_v10 = vpop.eup %1532 }
 0x4be   :  { %617 = vst [vmem:[#allocation9 + $0x20] sm:$0xff] %v1533_v10  ;;  %1247 = vmatmul.mubr.f32.vlgmr.msra.gmra.mrb[12].mxu0 %v1533_v10 }
 0x4bf   :  { %1493 = vmatpush3.bf16.msra.mxu0 %v1723_v5  ;;  %1316 = vmatprep.mubr.msk.f32.mxu0 %vm1640_vm0, %v1641_v1  ;;  %v198_v1 = vadd.f32 %v1825_v47, %v1804_v39 }
 0x4c0   :  { %1494 = vmatprep.subr.bf16.mxu0 %v1639_v0 }
 0x4c3   :  { %1496 = vmatpush3.bf16.msra.mxu0 %v1726_v8 }
 0x4c4   :  { %1497 = vmatprep.subr.bf16.mxu0 %v1639_v0 }
 0x4c7   :  { %1499 = vmatpush3.bf16.msra.mxu0 %v1731_v14 }
 0x4c8   :  { %1500 = vmatprep.subr.bf16.mxu0 %v1639_v0 }
 0x4cb   :  { %1502 = vmatpush3.bf16.msra.mxu0 %v1737_v18 }
 0x4cc   :  { %1503 = vmatprep.subr.bf16.mxu0 %v1639_v0 }
 0x4cf   :  { %1505 = vmatpush3.bf16.msra.mxu0 %v1743_v21 }
 0x4d0   :  { %1506 = vmatprep.subr.bf16.mxu0 %v1639_v0 }
 0x4d3   :  { %1508 = vmatpush3.bf16.msra.mxu0 %v1749_v24 }
 0x4d4   :  { %1509 = vmatprep.subr.bf16.mxu0 %v1639_v0 }
 0x4d7   :  { %1511 = vmatpush3.bf16.msra.mxu0 %v1755_v27 }
 0x4d8   :  { %1512 = vmatprep.subr.bf16.mxu0 %v1639_v0 }
 0x4db   :  { %1514 = vmatpush3.bf16.msra.mxu0 %v1761_v30 }
 0x591   :  { %v686_v5 = vpop.f32.mrb[12].mxu0 }
 0x592   :  { %v692_v8 = vadd.f32 %v686_v5, %v198_v1  ;;  %v1248_v11 = vpop.f32.mrb[13].mxu0 }
 0x594   :  { %1534 = vtanh.f32 %v692_v8 }
 0x59e   :  { %v1535_v12 = vpop.eup %1534 }
 0x59f   :  { %694 = vst [vmem:[#allocation9 + $0x28] sm:$0xff] %v1535_v12  ;;  %1282 = vmatmul.mubr.f32.vlgmr.msra.gmra.mrb[6].mxu1 %v1535_v12 }
 0x672   :  { %v763_v14 = vpop.f32.mrb[6].mxu1 }
 0x673   :  { %v769_v15 = vadd.f32 %v763_v14, %v203_v13  ;;  %v1283_v16 = vpop.f32.mrb[7].mxu1 }
 0x675   :  { %1536 = vtanh.f32 %v769_v15 }
 0x67f   :  { %v1537_v0 = vpop.eup %1536 }
 0x680   :  { %771 = vst [vmem:[#allocation9 + $0x30] sm:$0xff] %v1537_v0  ;;  %1317 = vmatmul.mubr.f32.vlgmr.msra.gmra.mrb[14].mxu0 %v1537_v0 }
 0x753   :  { %v840_v18 = vpop.f32.mrb[14].mxu0 }
 0x754   :  { %v846_v19 = vadd.f32 %v840_v18, %v208_v17  ;;  %v1318_v20 = vpop.f32.mrb[15].mxu0 }
 0x756   :  { %1538 = vtanh.f32 %v846_v19 }
 0x760   :  { %v1539_v21 = vpop.eup %1538 }
 0x761   :  { %848 = vst [vmem:[#allocation9 + $0x38] sm:$0xff] %v1539_v21 }
 0x762   :  { %1617 = shalt.err (!%p1614_p0)
}
 0x763   :  { %s1618_s6 = scalar_lea.hbm %s1933_s4, 1024 }
 0x764   :  { %p1619_p1 = scmp.ne.s32.totalorder %s1933_s4, %s1618_s6  ;;  %p1622_p2 = scmp.lt.u32.totalorder %s1618_s6, %s1933_s4 }
 0x766   :  { %p1624_p3 = pnand %p1622_p2, %p1619_p1 }
 0x768   :  { %1627 = shalt.err (!%p1624_p3)
}
 0x769   :  { %861 = dma.vmem_to_hbm [thread:$0]  %s856_s26, 1024, %s1933_s4, [#allocation5], %s1636_s27, %s1636_s27, %s1637_s28  }
 0x76a   :  { %1632 = dma.done.wait [#allocation5], 1024  }
 0x76b   :  { %1633 = vsyncadd [#allocation5], 4294966272 }
 0x76c   :  { %865 = vsyncpa [#allocation4], 1 }
 0x76d   :  { %866 = vsyncpa [#allocation7], 1 }
 0x76e   :  { %867 = vsyncpa [#allocation5], 1 }

// kernel: tpu_custom_call.1
= control target key start
LH: loop header
LB: loop body
LE: loop exit
PB: predicated region body
PF: predicated region fallthrough
CT: control target
= control target key end

     0   :  { %9 = vsyncpa [#allocation4], 0  ;;  %s1929_s0 = inlined_call_operand.hbm [shape: f32[8,8,16], index: 0, kind: input, shape index: {}]   ;;  %s1930_s1 = inlined_call_operand.hbm [shape: f32[16,128], index: 1, kind: input, shape index: {}]   ;;  %s1931_s2 = inlined_call_operand.vmem [shape: f32[1,128], index: 2, kind: input, shape index: {}]   ;;  %s1932_s3 = inlined_call_operand.hbm [shape: f32[128,128], index: 3, kind: input, shape index: {}]   ;;  %s1933_s4 = inlined_call_operand.hbm [shape: f32[8,8,128], index: 4, kind: output, shape index: {}]  }
   0x1   :  { %10 = vsyncpa [#allocation7], 0 }
   0x2   :  { %11 = vsyncpa [#allocation5], 0  ;;  %s1634_s15 = smov [#allocation6]   ;;  %s1635_s17 = smov [#allocation3]  }
   0x3   :  { %s29_s16 = sshll.u32 %s1634_s15, 4  ;;  %s17_s18 = sshll.u32 %s1635_s17, 4  ;;  %s30_s16 = int_to_ptr.vmem [resolvable:$true] %s29_s16  ;;  %s1668_s18 = int_to_ptr.vmem [resolvable:$true] %s17_s18 }
   0x4   :  { %s1540_s21 = scalar_lea.hbm %s1930_s1, 256 }
   0x5   :  { %p1541_p0 = scmp.ne.s32.totalorder %s1930_s1, %s1540_s21  ;;  %p1544_p1 = scmp.lt.u32.totalorder %s1540_s21, %s1930_s1 }
   0x7   :  { %p1546_p2 = pnand %p1544_p1, %p1541_p0 }
   0x9   :  { %1549 = shalt.err (!%p1546_p2)
}
   0xa   :  { %s1550_s26 = scalar_lea.vmem %s30_s16, 256  ;;  %p1555_p4 = scmp.lt.s32.totalorder %s30_s16, %s30_s16 }
   0xb   :  { %p1551_p3 = scmp.ne.s32.totalorder %s30_s16, %s1550_s26  ;;  %p1556_p5 = scmp.lt.s32.totalorder %s1550_s26, %s1550_s26 }
   0xd   :  { %p1557_p6 = por %p1556_p5, %p1555_p4 }
   0xf   :  { %p1558_p7 = pnand %p1557_p6, %p1551_p3 }
  0x11   :  { %1561 = shalt.err (!%p1558_p7)
}
  0x12   :  { %s1636_s27 = smov 128   ;;  %s1637_s28 = smov 8  }
  0x13   :  { %35 = dma.hbm_to_vmem [thread:$0]  %s1930_s1, 256, %s30_s16, [#allocation7], %s1636_s27, %s1636_s27, %s1637_s28  }
  0x14   :  { %s1562_s7 = scalar_lea.hbm %s1929_s0, 1024 }
  0x15   :  { %p1563_p8 = scmp.ne.s32.totalorder %s1929_s0, %s1562_s7  ;;  %p1566_p9 = scmp.lt.u32.totalorder %s1562_s7, %s1929_s0 }
  0x17   :  { %p1568_p10 = pnand %p1566_p9, %p1563_p8 }
  0x19   :  { %1571 = shalt.err (!%p1568_p10)
}
  0x1a   :  { %s1572_s12 = scalar_lea.vmem %s1668_s18, 1024  ;;  %p1577_p12 = scmp.lt.s32.totalorder %s1668_s18, %s1668_s18 }
  0x1b   :  { %p1573_p11 = scmp.ne.s32.totalorder %s1668_s18, %s1572_s12  ;;  %p1578_p13 = scmp.lt.s32.totalorder %s1572_s12, %s1572_s12 }
  0x1d   :  { %p1579_p0 = por %p1578_p13, %p1577_p12 }
  0x1f   :  { %p1580_p1 = pnand %p1579_p0, %p1573_p11 }
  0x21   :  { %1583 = shalt.err (!%p1580_p1)
}
  0x22   :  { %23 = dma.hbm_to_vmem [thread:$0]  %s1929_s0, 1024, %s1668_s18, [#allocation4], %s1636_s27, %s1636_s27, %s1637_s28  }
  0x23   :  { %s1638_s14 = smov [#allocation8]   ;;  %s1584_s19 = scalar_lea.hbm %s1932_s3, 2048 }
  0x24   :  { %s43_s15 = sshll.u32 %s1638_s14, 4  ;;  %p1585_p2 = scmp.ne.s32.totalorder %s1932_s3, %s1584_s19  ;;  %s44_s15 = int_to_ptr.vmem [resolvable:$true] %s43_s15 }
  0x25   :  { %p1588_p3 = scmp.lt.u32.totalorder %s1584_s19, %s1932_s3 }
  0x27   :  { %p1590_p4 = pnand %p1588_p3, %p1585_p2 }
  0x29   :  { %1593 = shalt.err (!%p1590_p4)
}
  0x2a   :  { %s1594_s24 = scalar_lea.vmem %s44_s15, 2048  ;;  %p1599_p6 = scmp.lt.s32.totalorder %s44_s15, %s44_s15 }
  0x2b   :  { %p1595_p5 = scmp.ne.s32.totalorder %s44_s15, %s1594_s24  ;;  %p1600_p7 = scmp.lt.s32.totalorder %s1594_s24, %s1594_s24 }
  0x2d   :  { %p1601_p8 = por %p1600_p7, %p1599_p6 }
  0x2f   :  { %p1602_p9 = pnand %p1601_p8, %p1595_p5 }
  0x31   :  { %1605 = shalt.err (!%p1602_p9)
}
  0x32   :  { %49 = dma.hbm_to_vmem [thread:$0]  %s1932_s3, 2048, %s44_s15, [#allocation7], %s1636_s27, %s1636_s27, %s1637_s28  }
  0x33   :  { %1628 = dma.done.wait [#allocation4], 1024  }
  0x34   :  { %1629 = vsyncadd [#allocation4], 4294966272 }
  0x35   :  { %1630 = dma.done.wait [#allocation7], 2304  }
  0x36   :  { %1631 = vsyncadd [#allocation7], 4294964992  ;;  %v1639_v0 = vmov 0.0|0.0   ;;  %vm1640_vm0 = vmmov 0   ;;  %v1641_v1 = vmov 0.0   ;;  %v219_v2 = vld [vmem:[#allocation8] sm:$0xff] }
  0x37   :  { %1323 = vmatprep.subr.bf16.mxu1 %v1639_v0  ;;  %1071 = vmatprep.mubr.msk.f32.mxu1 %vm1640_vm0, %v1641_v1  ;;  %v220_v3 = vld [vmem:[#allocation8 + $0x8] sm:$0xff]  ;;  %v221_v4 = vld [vmem:[#allocation8 + $0x10] sm:$0xff]  ;;  %v222_v6 = vld [vmem:[#allocation8 + $0x18] sm:$0xff]  ;;  %vm81_vm1 = vcmask 130048  }
  0x38   :  { %v1723_v5 = vpack.c.bf16 %v220_v3, %v219_v2  ;;  %v72_v7 = vld [vmem:[#allocation6] sm:$0xff]  ;;  %v1726_v8 = vpack.c.bf16 %v222_v6, %v221_v4  ;;  %v73_v9 = vld [vmem:[#allocation6 + $0x8] sm:$0xff]  ;;  %v223_v10 = vld [vmem:[#allocation8 + $0x20] sm:$0xff] }
  0x39   :  { %v224_v11 = vld [vmem:[#allocation8 + $0x28] sm:$0xff]  ;;  %v1319_v12 = vpack.c.bf16 %v73_v9, %v72_v7  ;;  %v64_v13 = vld [vmem:[#allocation3] sm:$0xff]  ;;  %v65_v15 = vld [vmem:[#allocation3 + $0x8] sm:$0xff] }
  0x3a   :  { %1325 = vmatpush3.bf16.msra.mxu1 %v1723_v5  ;;  %1027 = vmatprep.mubr.msk.f32.mxu0 %vm81_vm1, %v64_v13  ;;  %v1731_v14 = vpack.c.bf16 %v224_v11, %v223_v10  ;;  %v225_v16 = vld [vmem:[#allocation8 + $0x30] sm:$0xff]  ;;  %v226_v17 = vld [vmem:[#allocation8 + $0x38] sm:$0xff]  ;;  %v227_v19 = vld [vmem:[#allocation8 + $0x40] sm:$0xff] }
  0x3b   :  { %1326 = vmatprep.subr.bf16.mxu1 %v1639_v0  ;;  %1320 = vmatprep.subr.bf16.mxu0 %v1319_v12  ;;  %v1737_v18 = vpack.c.bf16 %v226_v17, %v225_v16  ;;  %v228_v20 = vld [vmem:[#allocation8 + $0x48] sm:$0xff]  ;;  %v229_v22 = vld [vmem:[#allocation8 + $0x50] sm:$0xff]  ;;  %v230_v23 = vld [vmem:[#allocation8 + $0x58] sm:$0xff] }
  0x3c   :  { %1322 = vmatpush3.bf16.msra.mxu0 %v1319_v12  ;;  %v1743_v21 = vpack.c.bf16 %v228_v20, %v227_v19  ;;  %v1749_v24 = vpack.c.bf16 %v230_v23, %v229_v22  ;;  %v231_v25 = vld [vmem:[#allocation8 + $0x60] sm:$0xff]  ;;  %v232_v26 = vld [vmem:[#allocation8 + $0x68] sm:$0xff]  ;;  %v233_v28 = vld [vmem:[#allocation8 + $0x70] sm:$0xff] }
  0x3d   :  { %1347 = vmatprep.subr.bf16.mxu0 %v1639_v0  ;;  %v1755_v27 = vpack.c.bf16 %v232_v26, %v231_v25  ;;  %v234_v29 = vld [vmem:[#allocation8 + $0x78] sm:$0xff]  ;;  %v66_v31 = vld [vmem:[#allocation3 + $0x10] sm:$0xff]  ;;  %v67_v32 = vld [vmem:[#allocation3 + $0x18] sm:$0xff] }
  0x3e   :  { %1328 = vmatpush3.bf16.msra.mxu1 %v1726_v8  ;;  %v1761_v30 = vpack.c.bf16 %v234_v29, %v233_v28  ;;  %v68_v33 = vld [vmem:[#allocation3 + $0x20] sm:$0xff]  ;;  %v69_v34 = vld [vmem:[#allocation3 + $0x28] sm:$0xff]  ;;  %v70_v35 = vld [vmem:[#allocation3 + $0x30] sm:$0xff] }
  0x3f   :  { %1329 = vmatprep.subr.bf16.mxu1 %v1639_v0  ;;  %1028 = vmatmul.mubr.msk.f32.vlgmr.msra.gmra.mrb[0].mxu0 %vm81_vm1, %v65_v15  ;;  %v71_v36 = vld [vmem:[#allocation3 + $0x38] sm:$0xff]  ;;  %v1804_v39 = vld [vmem:[%s1931_s2] ss:$0 sm:$0xff]  ;;  %s1642_s2 = smov [#allocation9]  }
  0x40   :  { %1349 = vmatpush3.bf16.msra.mxu0 %v1723_v5  ;;  %1030 = vmatprep.mubr.msk.f32.mxu0 %vm81_vm1, %v66_v31  ;;  %s855_s26 = sshll.u32 %s1642_s2, 4  ;;  %s856_s26 = int_to_ptr.vmem [resolvable:$true] %s855_s26 }
  0x41   :  { %1350 = vmatprep.subr.bf16.mxu0 %v1639_v0  ;;  %s1606_s29 = scalar_lea.vmem %s856_s26, 1024  ;;  %p1611_p11 = scmp.lt.s32.totalorder %s856_s26, %s856_s26 }
  0x42   :  { %1331 = vmatpush3.bf16.msra.mxu1 %v1731_v14  ;;  %p1607_p10 = scmp.ne.s32.totalorder %s856_s26, %s1606_s29  ;;  %p1612_p12 = scmp.lt.s32.totalorder %s1606_s29, %s1606_s29 }
  0x43   :  { %1332 = vmatprep.subr.bf16.mxu1 %v1639_v0  ;;  %1031 = vmatmul.mubr.msk.f32.gmra.mrb[2].mxu0 %vm81_vm1, %v67_v32 }
  0x44   :  { %1352 = vmatpush3.bf16.msra.mxu0 %v1726_v8  ;;  %1033 = vmatprep.mubr.msk.f32.mxu0 %vm81_vm1, %v68_v33  ;;  %p1613_p13 = por %p1612_p12, %p1611_p11 }
  0x45   :  { %1353 = vmatprep.subr.bf16.mxu0 %v1639_v0 }
  0x46   :  { %1334 = vmatpush3.bf16.msra.mxu1 %v1737_v18  ;;  %p1614_p0 = pnand %p1613_p13, %p1607_p10 }
  0x47   :  { %1335 = vmatprep.subr.bf16.mxu1 %v1639_v0  ;;  %1034 = vmatmul.mubr.msk.f32.gmra.mrb[4].mxu0 %vm81_vm1, %v69_v34 }
  0x48   :  { %1355 = vmatpush3.bf16.msra.mxu0 %v1731_v14  ;;  %1036 = vmatprep.mubr.msk.f32.mxu0 %vm81_vm1, %v70_v35 }
  0x49   :  { %1356 = vmatprep.subr.bf16.mxu0 %v1639_v0 }
  0x4a   :  { %1337 = vmatpush3.bf16.msra.mxu1 %v1743_v21 }
  0x4b   :  { %1338 = vmatprep.subr.bf16.mxu1 %v1639_v0  ;;  %1037 = vmatmul.mubr.msk.f32.gmra.mrb[6].mxu0 %vm81_vm1, %v71_v36 }
  0x4c   :  { %1358 = vmatpush3.bf16.msra.mxu0 %v1737_v18  ;;  %1106 = vmatprep.mubr.msk.f32.mxu0 %vm1640_vm0, %v1641_v1 }
  0x4d   :  { %1359 = vmatprep.subr.bf16.mxu0 %v1639_v0 }
  0x4e   :  { %1340 = vmatpush3.bf16.msra.mxu1 %v1749_v24 }
  0x4f   :  { %1341 = vmatprep.subr.bf16.mxu1 %v1639_v0 }
  0x50   :  { %1361 = vmatpush3.bf16.msra.mxu0 %v1743_v21 }
  0x51   :  { %1362 = vmatprep.subr.bf16.mxu0 %v1639_v0 }
  0x52   :  { %1343 = vmatpush3.bf16.msra.mxu1 %v1755_v27 }
  0x53   :  { %1344 = vmatprep.subr.bf16.mxu1 %v1639_v0 }
  0x54   :  { %1364 = vmatpush3.bf16.msra.mxu0 %v1749_v24 }
  0x55   :  { %1365 = vmatprep.subr.bf16.mxu0 %v1639_v0 }
  0x56   :  { %1346 = vmatpush3.bf16.msra.mxu1 %v1761_v30 }
  0x57   :  { %1371 = vmatprep.subr.bf16.mxu1 %v1639_v0 }
  0x58   :  { %1367 = vmatpush3.bf16.msra.mxu0 %v1755_v27 }
  0x59   :  { %1072 = vmatmul.mubr.f32.vlgmr.msra.gmra.mrb[0].mxu1 %v1641_v1  ;;  %1368 = vmatprep.subr.bf16.mxu0 %v1639_v0 }
  0x5a   :  { %1373 = vmatpush3.bf16.msra.mxu1 %v1723_v5  ;;  %1141 = vmatprep.mubr.msk.f32.mxu1 %vm1640_vm0, %v1641_v1 }
  0x5b   :  { %1374 = vmatprep.subr.bf16.mxu1 %v1639_v0 }
  0x5c   :  { %1370 = vmatpush3.bf16.msra.mxu0 %v1761_v30 }
  0x5d   :  { %1395 = vmatprep.subr.bf16.mxu0 %v1639_v0 }
  0x5e   :  { %1376 = vmatpush3.bf16.msra.mxu1 %v1726_v8 }
  0x5f   :  { %1377 = vmatprep.subr.bf16.mxu1 %v1639_v0 }
  0x62   :  { %1379 = vmatpush3.bf16.msra.mxu1 %v1731_v14 }
  0x63   :  { %1380 = vmatprep.subr.bf16.mxu1 %v1639_v0 }
  0x66   :  { %1382 = vmatpush3.bf16.msra.mxu1 %v1737_v18 }
  0x67   :  { %1383 = vmatprep.subr.bf16.mxu1 %v1639_v0 }
  0x6a   :  { %1385 = vmatpush3.bf16.msra.mxu1 %v1743_v21 }
  0x6b   :  { %1386 = vmatprep.subr.bf16.mxu1 %v1639_v0 }
  0x6e   :  { %1388 = vmatpush3.bf16.msra.mxu1 %v1749_v24 }
  0x6f   :  { %1389 = vmatprep.subr.bf16.mxu1 %v1639_v0 }
  0x72   :  { %1391 = vmatpush3.bf16.msra.mxu1 %v1755_v27 }
  0x73   :  { %1392 = vmatprep.subr.bf16.mxu1 %v1639_v0 }
  0x76   :  { %1394 = vmatpush3.bf16.msra.mxu1 %v1761_v30 }
  0x77   :  { %1419 = vmatprep.subr.bf16.mxu1 %v1639_v0 }
 0x112   :  { %v1029_v37 = vpop.f32.mrb[0].mxu0 }
 0x113   :  { %v172_v38 = vpop.f32.mrb[1].mxu0  ;;  %v178_v51 = vadd.f32 %v1029_v37, %v1804_v39 }
 0x114   :  { %v173_v40 = vadd.f32 %v1804_v39, %v172_v38 }
 0x116   :  { %v1032_v45 = vpop.f32.mrb[2].mxu0 }
 0x117   :  { %v182_v46 = vpop.f32.mrb[3].mxu0  ;;  %v188_v61 = vadd.f32 %v1032_v45, %v1804_v39 }
 0x118   :  { %v183_v56 = vadd.f32 %v1804_v39, %v182_v46 }
 0x11a   :  { %v1825_v47 = vpop.f32.mrb[4].mxu0 }
 0x11b   :  { %v1827_v48 = vpop.f32.mrb[5].mxu0 }
 0x11c   :  { %v193_v4 = vadd.f32 %v1804_v39, %v1827_v48 }
 0x11e   :  { %v1829_v49 = vpop.f32.mrb[6].mxu0 }
 0x11f   :  { %v1831_v50 = vpop.f32.mrb[7].mxu0  ;;  %v208_v17 = vadd.f32 %v1829_v49, %v1804_v39 }
 0x120   :  { %v203_v13 = vadd.f32 %v1804_v39, %v1831_v50 }
 0x12c   :  { %v302_v41 = vpop.f32.mrb[0].mxu1 }
 0x12d   :  { %v307_v42 = vadd.f32 %v302_v41, %v173_v40  ;;  %v1073_v43 = vpop.f32.mrb[1].mxu1 }
 0x12f   :  { %1524 = vtanh.f32 %v307_v42 }
 0x139   :  { %v1525_v44 = vpop.eup %1524 }
 0x13a   :  { %309 = vst [vmem:[#allocation9] sm:$0xff] %v1525_v44  ;;  %1107 = vmatmul.mubr.f32.vlgmr.msra.gmra.mrb[8].mxu0 %v1525_v44 }
 0x13b   :  { %1397 = vmatpush3.bf16.msra.mxu0 %v1723_v5  ;;  %1176 = vmatprep.mubr.msk.f32.mxu0 %vm1640_vm0, %v1641_v1 }
 0x13c   :  { %1398 = vmatprep.subr.bf16.mxu0 %v1639_v0 }
 0x13f   :  { %1400 = vmatpush3.bf16.msra.mxu0 %v1726_v8 }
 0x140   :  { %1401 = vmatprep.subr.bf16.mxu0 %v1639_v0 }
 0x143   :  { %1403 = vmatpush3.bf16.msra.mxu0 %v1731_v14 }
 0x144   :  { %1404 = vmatprep.subr.bf16.mxu0 %v1639_v0 }
 0x147   :  { %1406 = vmatpush3.bf16.msra.mxu0 %v1737_v18 }
 0x148   :  { %1407 = vmatprep.subr.bf16.mxu0 %v1639_v0 }
 0x14b   :  { %1409 = vmatpush3.bf16.msra.mxu0 %v1743_v21 }
 0x14c   :  { %1410 = vmatprep.subr.bf16.mxu0 %v1639_v0 }
 0x14f   :  { %1412 = vmatpush3.bf16.msra.mxu0 %v1749_v24 }
 0x150   :  { %1413 = vmatprep.subr.bf16.mxu0 %v1639_v0 }
 0x153   :  { %1415 = vmatpush3.bf16.msra.mxu0 %v1755_v27 }
 0x154   :  { %1416 = vmatprep.subr.bf16.mxu0 %v1639_v0 }
 0x157   :  { %1418 = vmatpush3.bf16.msra.mxu0 %v1761_v30 }
 0x158   :  { %1443 = vmatprep.subr.bf16.mxu0 %v1639_v0 }
 0x20d   :  { %v378_v52 = vpop.f32.mrb[8].mxu0 }
 0x20e   :  { %v384_v53 = vadd.f32 %v378_v52, %v178_v51  ;;  %v1108_v54 = vpop.f32.mrb[9].mxu0 }
 0x210   :  { %1526 = vtanh.f32 %v384_v53 }
 0x21a   :  { %v1527_v55 = vpop.eup %1526 }
 0x21b   :  { %386 = vst [vmem:[#allocation9 + $0x8] sm:$0xff] %v1527_v55  ;;  %1142 = vmatmul.mubr.f32.vlgmr.msra.gmra.mrb[2].mxu1 %v1527_v55 }
 0x21c   :  { %1421 = vmatpush3.bf16.msra.mxu1 %v1723_v5  ;;  %1211 = vmatprep.mubr.msk.f32.mxu1 %vm1640_vm0, %v1641_v1 }
 0x21d   :  { %1422 = vmatprep.subr.bf16.mxu1 %v1639_v0 }
 0x220   :  { %1424 = vmatpush3.bf16.msra.mxu1 %v1726_v8 }
 0x221   :  { %1425 = vmatprep.subr.bf16.mxu1 %v1639_v0 }
 0x224   :  { %1427 = vmatpush3.bf16.msra.mxu1 %v1731_v14 }
 0x225   :  { %1428 = vmatprep.subr.bf16.mxu1 %v1639_v0 }
 0x228   :  { %1430 = vmatpush3.bf16.msra.mxu1 %v1737_v18 }
 0x229   :  { %1431 = vmatprep.subr.bf16.mxu1 %v1639_v0 }
 0x22c   :  { %1433 = vmatpush3.bf16.msra.mxu1 %v1743_v21 }
 0x22d   :  { %1434 = vmatprep.subr.bf16.mxu1 %v1639_v0 }
 0x230   :  { %1436 = vmatpush3.bf16.msra.mxu1 %v1749_v24 }
 0x231   :  { %1437 = vmatprep.subr.bf16.mxu1 %v1639_v0 }
 0x234   :  { %1439 = vmatpush3.bf16.msra.mxu1 %v1755_v27 }
 0x235   :  { %1440 = vmatprep.subr.bf16.mxu1 %v1639_v0 }
 0x238   :  { %1442 = vmatpush3.bf16.msra.mxu1 %v1761_v30 }
 0x239   :  { %1467 = vmatprep.subr.bf16.mxu1 %v1639_v0 }
 0x2ee   :  { %v455_v57 = vpop.f32.mrb[2].mxu1 }
 0x2ef   :  { %v461_v58 = vadd.f32 %v455_v57, %v183_v56  ;;  %v1143_v59 = vpop.f32.mrb[3].mxu1 }
 0x2f1   :  { %1528 = vtanh.f32 %v461_v58 }
 0x2fb   :  { %v1529_v60 = vpop.eup %1528 }
 0x2fc   :  { %463 = vst [vmem:[#allocation9 + $0x10] sm:$0xff] %v1529_v60  ;;  %1177 = vmatmul.mubr.f32.vlgmr.msra.gmra.mrb[10].mxu0 %v1529_v60 }
 0x2fd   :  { %1445 = vmatpush3.bf16.msra.mxu0 %v1723_v5  ;;  %1246 = vmatprep.mubr.msk.f32.mxu0 %vm1640_vm0, %v1641_v1 }
 0x2fe   :  { %1446 = vmatprep.subr.bf16.mxu0 %v1639_v0 }
 0x301   :  { %1448 = vmatpush3.bf16.msra.mxu0 %v1726_v8 }
 0x302   :  { %1449 = vmatprep.subr.bf16.mxu0 %v1639_v0 }
 0x305   :  { %1451 = vmatpush3.bf16.msra.mxu0 %v1731_v14 }
 0x306   :  { %1452 = vmatprep.subr.bf16.mxu0 %v1639_v0 }
 0x309   :  { %1454 = vmatpush3.bf16.msra.mxu0 %v1737_v18 }
 0x30a   :  { %1455 = vmatprep.subr.bf16.mxu0 %v1639_v0 }
 0x30d   :  { %1457 = vmatpush3.bf16.msra.mxu0 %v1743_v21 }
 0x30e   :  { %1458 = vmatprep.subr.bf16.mxu0 %v1639_v0 }
 0x311   :  { %1460 = vmatpush3.bf16.msra.mxu0 %v1749_v24 }
 0x312   :  { %1461 = vmatprep.subr.bf16.mxu0 %v1639_v0 }
 0x315   :  { %1463 = vmatpush3.bf16.msra.mxu0 %v1755_v27 }
 0x316   :  { %1464 = vmatprep.subr.bf16.mxu0 %v1639_v0 }
 0x319   :  { %1466 = vmatpush3.bf16.msra.mxu0 %v1761_v30 }
 0x31a   :  { %1491 = vmatprep.subr.bf16.mxu0 %v1639_v0 }
 0x3cf   :  { %v532_v62 = vpop.f32.mrb[10].mxu0 }
 0x3d0   :  { %v538_v63 = vadd.f32 %v532_v62, %v188_v61  ;;  %v1178_v2 = vpop.f32.mrb[11].mxu0 }
 0x3d2   :  { %1530 = vtanh.f32 %v538_v63 }
 0x3dc   :  { %v1531_v3 = vpop.eup %1530 }
 0x3dd   :  { %540 = vst [vmem:[#allocation9 + $0x18] sm:$0xff] %v1531_v3  ;;  %1212 = vmatmul.mubr.f32.vlgmr.msra.gmra.mrb[4].mxu1 %v1531_v3 }
 0x3de   :  { %1469 = vmatpush3.bf16.msra.mxu1 %v1723_v5  ;;  %1281 = vmatprep.mubr.msk.f32.mxu1 %vm1640_vm0, %v1641_v1 }
 0x3df   :  { %1470 = vmatprep.subr.bf16.mxu1 %v1639_v0 }
 0x3e2   :  { %1472 = vmatpush3.bf16.msra.mxu1 %v1726_v8 }
 0x3e3   :  { %1473 = vmatprep.subr.bf16.mxu1 %v1639_v0 }
 0x3e6   :  { %1475 = vmatpush3.bf16.msra.mxu1 %v1731_v14 }
 0x3e7   :  { %1476 = vmatprep.subr.bf16.mxu1 %v1639_v0 }
 0x3ea   :  { %1478 = vmatpush3.bf16.msra.mxu1 %v1737_v18 }
 0x3eb   :  { %1479 = vmatprep.subr.bf16.mxu1 %v1639_v0 }
 0x3ee   :  { %1481 = vmatpush3.bf16.msra.mxu1 %v1743_v21 }
 0x3ef   :  { %1482 = vmatprep.subr.bf16.mxu1 %v1639_v0 }
 0x3f2   :  { %1484 = vmatpush3.bf16.msra.mxu1 %v1749_v24 }
 0x3f3   :  { %1485 = vmatprep.subr.bf16.mxu1 %v1639_v0 }
 0x3f6   :  { %1487 = vmatpush3.bf16.msra.mxu1 %v1755_v27 }
 0x3f7   :  { %1488 = vmatprep.subr.bf16.mxu1 %v1639_v0 }
 0x3fa   :  { %1490 = vmatpush3.bf16.msra.mxu1 %v1761_v30 }
 0x4b0   :  { %v609_v6 = vpop.f32.mrb[4].mxu1 }
 0x4b1   :  { %v615_v7 = vadd.f32 %v609_v6, %v193_v4  ;;  %v1213_v9 = vpop.f32.mrb[5].mxu1 }
 0x4b3   :  { %1532 = vtanh.f32 %v615_v7 }
 0x4bd   :  { %v1533_v10 = vpop.eup %1532 }
 0x4be   :  { %617 = vst [vmem:[#allocation9 + $0x20] sm:$0xff] %v1533_v10  ;;  %1247 = vmatmul.mubr.f32.vlgmr.msra.gmra.mrb[12].mxu0 %v1533_v10 }
 0x4bf   :  { %1493 = vmatpush3.bf16.msra.mxu0 %v1723_v5  ;;  %1316 = vmatprep.mubr.msk.f32.mxu0 %vm1640_vm0, %v1641_v1  ;;  %v198_v1 = vadd.f32 %v1825_v47, %v1804_v39 }
 0x4c0   :  { %1494 = vmatprep.subr.bf16.mxu0 %v1639_v0 }
 0x4c3   :  { %1496 = vmatpush3.bf16.msra.mxu0 %v1726_v8 }
 0x4c4   :  { %1497 = vmatprep.subr.bf16.mxu0 %v1639_v0 }
 0x4c7   :  { %1499 = vmatpush3.bf16.msra.mxu0 %v1731_v14 }
 0x4c8   :  { %1500 = vmatprep.subr.bf16.mxu0 %v1639_v0 }
 0x4cb   :  { %1502 = vmatpush3.bf16.msra.mxu0 %v1737_v18 }
 0x4cc   :  { %1503 = vmatprep.subr.bf16.mxu0 %v1639_v0 }
 0x4cf   :  { %1505 = vmatpush3.bf16.msra.mxu0 %v1743_v21 }
 0x4d0   :  { %1506 = vmatprep.subr.bf16.mxu0 %v1639_v0 }
 0x4d3   :  { %1508 = vmatpush3.bf16.msra.mxu0 %v1749_v24 }
 0x4d4   :  { %1509 = vmatprep.subr.bf16.mxu0 %v1639_v0 }
 0x4d7   :  { %1511 = vmatpush3.bf16.msra.mxu0 %v1755_v27 }
 0x4d8   :  { %1512 = vmatprep.subr.bf16.mxu0 %v1639_v0 }
 0x4db   :  { %1514 = vmatpush3.bf16.msra.mxu0 %v1761_v30 }
 0x591   :  { %v686_v5 = vpop.f32.mrb[12].mxu0 }
 0x592   :  { %v692_v8 = vadd.f32 %v686_v5, %v198_v1  ;;  %v1248_v11 = vpop.f32.mrb[13].mxu0 }
 0x594   :  { %1534 = vtanh.f32 %v692_v8 }
 0x59e   :  { %v1535_v12 = vpop.eup %1534 }
 0x59f   :  { %694 = vst [vmem:[#allocation9 + $0x28] sm:$0xff] %v1535_v12  ;;  %1282 = vmatmul.mubr.f32.vlgmr.msra.gmra.mrb[6].mxu1 %v1535_v12 }
 0x672   :  { %v763_v14 = vpop.f32.mrb[6].mxu1 }
 0x673   :  { %v769_v15 = vadd.f32 %v763_v14, %v203_v13  ;;  %v1283_v16 = vpop.f32.mrb[7].mxu1 }
 0x675   :  { %1536 = vtanh.f32 %v769_v15 }
 0x67f   :  { %v1537_v0 = vpop.eup %1536 }
 0x680   :  { %771 = vst [vmem:[#allocation9 + $0x30] sm:$0xff] %v1537_v0  ;;  %1317 = vmatmul.mubr.f32.vlgmr.msra.gmra.mrb[14].mxu0 %v1537_v0 }
 0x753   :  { %v840_v18 = vpop.f32.mrb[14].mxu0 }
 0x754   :  { %v846_v19 = vadd.f32 %v840_v18, %v208_v17  ;;  %v1318_v20 = vpop.f32.mrb[15].mxu0 }
 0x756   :  { %1538 = vtanh.f32 %v846_v19 }
 0x760   :  { %v1539_v21 = vpop.eup %1538 }
 0x761   :  { %848 = vst [vmem:[#allocation9 + $0x38] sm:$0xff] %v1539_v21 }
 0x762   :  { %1617 = shalt.err (!%p1614_p0)
}
 0x763   :  { %s1618_s6 = scalar_lea.hbm %s1933_s4, 1024 }
 0x764   :  { %p1619_p1 = scmp.ne.s32.totalorder %s1933_s4, %s1618_s6  ;;  %p1622_p2 = scmp.lt.u32.totalorder %s1618_s6, %s1933_s4 }
 0x766   :  { %p1624_p3 = pnand %p1622_p2, %p1619_p1 }
 0x768   :  { %1627 = shalt.err (!%p1624_p3)
}
 0x769   :  { %861 = dma.vmem_to_hbm [thread:$0]  %s856_s26, 1024, %s1933_s4, [#allocation5], %s1636_s27, %s1636_s27, %s1637_s28  }
 0x76a   :  { %1632 = dma.done.wait [#allocation5], 1024  }
 0x76b   :  { %1633 = vsyncadd [#allocation5], 4294966272 }
 0x76c   :  { %865 = vsyncpa [#allocation4], 1 }
 0x76d   :  { %866 = vsyncpa [#allocation7], 1 }
 0x76e   :  { %867 = vsyncpa [#allocation5], 1 }

</bundles_post_ra>
